<compile_context>
chip_gen: v7x
topology: tpu7x:2x2x1
jax: 0.10.0
libtpu: 0.0.40
codegen_flags: <defaults>
</compile_context>

<pallas_src>
import functools

import jax
import jax.numpy as jnp
from jax.experimental import pallas as pl
from jax.experimental.pallas import tpu as pltpu


# ---------------------------------------------------------------------------
# Kernel: one grid step processes a (TB*L, D) slab of TB batch elements.
# ---------------------------------------------------------------------------
def _temporal_kernel(x_ref, wd_ref, wbig_ref, vec_ref, out_ref, *,
                     tb, lag, dim, num_classes):
    D, C, L = dim, num_classes, lag

    x = x_ref[...]                                                   # (TB*L, D)

    # d = Tanh(Linear(dim, dim))(input)
    b_d = vec_ref[0:1, 0:D]                                          # (1, D)
    d = jnp.tanh(jnp.dot(x, wd_ref[...],
                         preferred_element_type=jnp.float32) + b_d)  # (TB*L, D)

    # Fused matmul: d @ [W_v1 | W_vd | W_a1 | W_fd] + [b_v1 | b_vd | b_a1 | b_f]
    fused = jnp.dot(d, wbig_ref[...],
                    preferred_element_type=jnp.float32) + vec_ref[1:2, :]

    h    = jnp.tanh(fused[:, 0:D])                   # Tanh(Linear(d)) for v_info
    vdep = jnp.tanh(fused[:, D:2 * D])               # v_dependency(d)
    a_lg = fused[:, 2 * D:2 * D + C]                 # z_aux logits
    fd   = fused[:, 2 * D + C:2 * D + 2 * C]         # d @ W_final[1:] + b_final

    # v_inf = Linear(dim, 1)(h)  ->  VPU multiply + lane reduce (no N=1 matmul)
    wv2 = vec_ref[2:3, 0:D]
    bv2 = vec_ref[2:3, D:D + 1]
    v_inf = jnp.sum(h * wv2, axis=-1, keepdims=True) + bv2           # (TB*L, 1)

    # z_aux = Linear(C, 1)(Tanh(Softmax(a_lg)))
    a_max = jnp.max(a_lg, axis=-1, keepdims=True)
    a_exp = jnp.exp(a_lg - a_max)
    a_sm = a_exp / jnp.sum(a_exp, axis=-1, keepdims=True)
    wa2 = vec_ref[3:4, 0:C]
    ba2 = vec_ref[3:4, C:C + 1]
    aux = jnp.sum(jnp.tanh(a_sm) * wa2, axis=-1, keepdims=True) + ba2  # (TB*L, 1)

    # Per-batch-element scalar:
    #   s[t] = sum_l aux[t,l] * v_inf[t,l] * (d_target[t] . vdep[t,l])
    #        = d_target[t] . sum_l (aux*v_inf)[t,l] * vdep[t,l]
    av = aux * v_inf                                                  # (TB*L, 1)
    g = jnp.sum((av * vdep).reshape(tb, L, D), axis=1)                # (TB, D)
    d_tgt = d.reshape(tb, L, D)[:, L - 1, :]                          # (TB, D)
    s = jnp.sum(g * d_tgt, axis=-1, keepdims=True)                    # (TB, 1)

    # z_final = Softmax(Linear(dim+1, C)(cat(s, d_target)))
    # (d_target @ W_final[1:] + b_final was produced by the fused matmul above)
    fd_tgt = fd.reshape(tb, L, C)[:, L - 1, :]                        # (TB, C)
    wfs = vec_ref[4:5, 0:C]                                           # (1, C)
    logits = s * wfs + fd_tgt                                         # (TB, C)
    m = jnp.max(logits, axis=-1, keepdims=True)
    e = jnp.exp(logits - m)
    out_ref[...] = e / jnp.sum(e, axis=-1, keepdims=True)             # (TB, C)


# ---------------------------------------------------------------------------
# Batch-tile selection
# ---------------------------------------------------------------------------
def _pick_tb(batch, lag):
    """>=128 rows per grid step (MXU fill), TB a multiple of 8 (output-block
    sublane constraint), grown up to ~2048 rows while keeping >=2 grid steps so
    v7x's two TensorCores both get work.  VMEM is a non-issue at these shapes."""
    tb = max(8, -(-128 // lag))
    tb = -(-tb // 8) * 8
    while tb * lag < 2048 and batch >= 4 * tb:
        tb *= 2
    return tb


# ---------------------------------------------------------------------------
# Wrapper
# ---------------------------------------------------------------------------
def temporal_forward(x, packed_params, *, lag, dim, num_classes, tb=None):
    B, L, D = x.shape
    assert L == lag and D == dim
    C = num_classes
    wd, wbig, vec = packed_params
    W = 2 * D + 2 * C
    assert wd.shape == (D, D) and wbig.shape == (D, W) and vec.shape == (5, W)

    if tb is None:
        tb = _pick_tb(B, L)
    b_pad = -(-B // tb) * tb
    if b_pad != B:  # pad the batch; padded rows are computed and discarded
        x = jnp.concatenate([x, jnp.zeros((b_pad - B, L, D), x.dtype)], axis=0)
    x_flat = x.reshape(b_pad * L, D).astype(jnp.float32)
    rows = tb * L

    kernel = functools.partial(_temporal_kernel, tb=tb, lag=L, dim=D,
                               num_classes=C)
    out = pl.pallas_call(
        kernel,
        out_shape=jax.ShapeDtypeStruct((b_pad, C), jnp.float32),
        grid=(b_pad // tb,),
        in_specs=[
            pl.BlockSpec((rows, D), lambda i: (i, 0)),   # x: new block per step
            pl.BlockSpec((D, D), lambda i: (0, 0)),      # W_d: resident
            pl.BlockSpec((D, W), lambda i: (0, 0)),      # fused weight: resident
            pl.BlockSpec((5, W), lambda i: (0, 0)),      # bias/vector pack: resident
        ],
        out_specs=pl.BlockSpec((tb, C), lambda i: (i, 0)),
        compiler_params=pltpu.CompilerParams(
            dimension_semantics=("parallel",)),
    )(x_flat, wd, wbig, vec)
    return out[:B].reshape(B, 1, C)


# ---------------------------------------------------------------------------
# Deterministic parameter init (synthetic; PyTorch (out,in) weights stored as
# (in,out) so every layer computes x @ W + b).
# ---------------------------------------------------------------------------
def init_params(key, dim, num_classes):
    ks = jax.random.split(key, 7)

    def lin(k, fin, fout):
        kw, kb = jax.random.split(k)
        w = jax.random.normal(kw, (fin, fout), jnp.float32) * 0.1
        b = jax.random.normal(kb, (1, fout), jnp.float32) * 0.1
        return w, b

    wd, bd = lin(ks[0], dim, dim)                 # d: Linear(dim, dim)
    wv1, bv1 = lin(ks[1], dim, dim)               # v_info: Linear(dim, dim)
    wv2, bv2 = lin(ks[2], dim, 1)                 # v_info: Linear(dim, 1)
    wvd, bvd = lin(ks[3], dim, dim)               # v_dependency: Linear(dim, dim)
    wa1, ba1 = lin(ks[4], dim, num_classes)       # z_aux: Linear(dim, C)
    wa2, ba2 = lin(ks[5], num_classes, 1)         # z_aux: Linear(C, 1)
    wf, bf = lin(ks[6], dim + 1, num_classes)     # z_final: Linear(dim+1, C)
    wfs = wf[0:1, :]                              # weight row for the concat'd scalar
    wfd = wf[1:, :]                               # weight rows for d_target
    return (wd, bd, wv1, bv1, wv2, bv2, wvd, bvd,
            wa1, ba1, wa2, ba2, wfs, wfd, bf)


# ---------------------------------------------------------------------------
# Host-side packing: 15 params -> 3 kernel inputs.
#   wbig = [W_v1 | W_vd | W_a1 | W_fd]                      (D, 2D+2C)
#   vec  = rows: [b_d | b_fused | (wv2^T, b_v2) | (wa2^T, b_a2) | w_fs]
# ---------------------------------------------------------------------------
def pack_params(params, dim, num_classes):
    (wd, bd, wv1, bv1, wv2, bv2, wvd, bvd,
     wa1, ba1, wa2, ba2, wfs, wfd, bf) = params
    D, C = dim, num_classes
    W = 2 * D + 2 * C

    wbig = jnp.concatenate([wv1, wvd, wa1, wfd], axis=1)            # (D, W)
    bbig = jnp.concatenate([bv1, bvd, ba1, bf], axis=1)             # (1, W)

    def pad(row):
        return jnp.pad(row, ((0, 0), (0, W - row.shape[1])))

    vec = jnp.concatenate([
        pad(bd),                                                     # row 0
        bbig,                                                        # row 1
        pad(jnp.concatenate([wv2.T, bv2], axis=1)),                  # row 2
        pad(jnp.concatenate([wa2.T, ba2], axis=1)),                  # row 3
        pad(wfs),                                                    # row 4
    ], axis=0)                                                       # (5, W)
    return wd, wbig, vec


# ---------------------------------------------------------------------------
# Pure-JAX reference (mirrors the PyTorch forward exactly) for verification.
# ---------------------------------------------------------------------------
def temporal_ref(x, params, *, lag):
    (wd, bd, wv1, bv1, wv2, bv2, wvd, bvd,
     wa1, ba1, wa2, ba2, wfs, wfd, bf) = params
    B = x.shape[0]
    with jax.default_matmul_precision("highest"):
        d = jnp.tanh(x @ wd + bd)                                 # (B,L,D)
        v_inf = jnp.tanh(d @ wv1 + bv1) @ wv2 + bv2               # (B,L,1)
        d_target = d[:, lag - 1:lag, :]                           # (B,1,D)
        vdep = jnp.tanh(d @ wvd + bvd)                            # (B,L,D)
        v_dep = jnp.einsum('bod,bld->bol', d_target, vdep)        # (B,1,L)
        v = v_inf.reshape(B, 1, -1) * v_dep                       # (B,1,L)
        a_sm = jax.nn.softmax(d @ wa1 + ba1, axis=-1)
        aux = jnp.tanh(a_sm) @ wa2 + ba2                          # (B,L,1)
        sc = jnp.einsum('blo,bol->b', aux, v)[:, None, None]      # (B,1,1)
        cat = jnp.concatenate([sc, d_target], axis=2)             # (B,1,D+1)
        wf = jnp.concatenate([wfs, wfd], axis=0)
        logits = cat @ wf + bf
        return jax.nn.softmax(logits, axis=-1)                    # (B,1,C)


if __name__ == "__main__":
    BATCH = 32
    LAG = 8
    DIM = 32
    NUM_CLASSES = 2   # Softmax(dim=num_classes) is last-axis only for C <= 2

    key = jax.random.PRNGKey(0)
    kx, kp = jax.random.split(key)
    x = jax.random.normal(kx, (BATCH, LAG, DIM), jnp.float32)
    params = init_params(kp, DIM, NUM_CLASSES)
    packed = pack_params(params, DIM, NUM_CLASSES)

    fwd = jax.jit(functools.partial(temporal_forward,
                                    lag=LAG, dim=DIM, num_classes=NUM_CLASSES))

    out = jax.block_until_ready(fwd(x, packed))
    ref = temporal_ref(x, params, lag=LAG)
    assert out.shape == (BATCH, 1, NUM_CLASSES), out.shape
    assert jnp.allclose(out, ref, rtol=1e-5, atol=1e-5), (out, ref)

    # Exercise the tail-padding path (B not a multiple of the batch tile).
    x2 = jax.random.normal(jax.random.PRNGKey(1), (3, LAG, DIM), jnp.float32)
    out2 = jax.block_until_ready(fwd(x2, packed))
    ref2 = temporal_ref(x2, params, lag=LAG)
    assert out2.shape == (3, 1, NUM_CLASSES), out2.shape
    assert jnp.allclose(out2, ref2, rtol=1e-5, atol=1e-5), (out2, ref2)

    print("KERNEL_OK")
</pallas_src>

<mosaic_0001>
module attributes {stable_mosaic.version = 11 : i64} {
  func.func @_temporal_kernel(%arg0: i32, %arg1: memref<128x32xf32, #tpu.memory_space<vmem>>, %arg2: memref<32x32xf32, #tpu.memory_space<vmem>>, %arg3: memref<32x68xf32, #tpu.memory_space<vmem>>, %arg4: memref<5x68xf32, #tpu.memory_space<vmem>>, %arg5: memref<16x2xf32, #tpu.memory_space<vmem>>) attributes {dimension_semantics = [#tpu.dimension_semantics<parallel>], iteration_bounds = array<i64: 2>, scalar_prefetch = 0 : i64, scratch_operands = 0 : i64, tpu.core_type = #tpu.core_type<tc>, window_params = [{transform_indices = @transform_0, window_bounds = array<i64: 128, 32>}, {pipeline_mode = #tpu.pipeline_mode<synchronous>, transform_indices = @transform_1, window_bounds = array<i64: 32, 32>}, {pipeline_mode = #tpu.pipeline_mode<synchronous>, transform_indices = @transform_2, window_bounds = array<i64: 32, 68>}, {pipeline_mode = #tpu.pipeline_mode<synchronous>, transform_indices = @transform_3, window_bounds = array<i64: 5, 68>}, {transform_indices = @transform_4, window_bounds = array<i64: 16, 2>}]} {
    %c0 = arith.constant 0 : index
    %c0_0 = arith.constant 0 : index
    %0 = vector.load %arg1[%c0, %c0_0] : memref<128x32xf32, #tpu.memory_space<vmem>>, vector<128x32xf32>
    %c0_1 = arith.constant 0 : index
    %c0_2 = arith.constant 0 : index
    %1 = vector.load %arg4[%c0_1, %c0_2] : memref<5x68xf32, #tpu.memory_space<vmem>>, vector<1x32xf32>
    %c0_3 = arith.constant 0 : index
    %c0_4 = arith.constant 0 : index
    %2 = vector.load %arg2[%c0_3, %c0_4] : memref<32x32xf32, #tpu.memory_space<vmem>>, vector<32x32xf32>
    %cst = arith.constant dense<0.000000e+00> : vector<128x32xf32>
    %3 = tpu.matmul %0, %2, %cst {dimension_numbers = #tpu.dot_dimension_numbers<[1], [0], [0], [1], [0, 0, 1, 1], [], []>} : vector<128x32xf32>, vector<32x32xf32>, vector<128x32xf32> -> vector<128x32xf32>
    %4 = vector.broadcast %1 : vector<1x32xf32> to vector<128x32xf32>
    %5 = arith.addf %3, %4 : vector<128x32xf32>
    %6 = math.tanh %5 : vector<128x32xf32>
    %c0_5 = arith.constant 0 : index
    %c0_6 = arith.constant 0 : index
    %7 = vector.load %arg3[%c0_5, %c0_6] : memref<32x68xf32, #tpu.memory_space<vmem>>, vector<32x68xf32>
    %cst_7 = arith.constant dense<0.000000e+00> : vector<128x68xf32>
    %8 = tpu.matmul %6, %7, %cst_7 {dimension_numbers = #tpu.dot_dimension_numbers<[1], [0], [0], [1], [0, 0, 1, 1], [], []>} : vector<128x32xf32>, vector<32x68xf32>, vector<128x68xf32> -> vector<128x68xf32>
    %c1 = arith.constant 1 : index
    %c0_8 = arith.constant 0 : index
    %9 = vector.load %arg4[%c1, %c0_8] : memref<5x68xf32, #tpu.memory_space<vmem>>, vector<1x68xf32>
    %10 = vector.broadcast %9 : vector<1x68xf32> to vector<128x68xf32>
    %11 = arith.addf %8, %10 : vector<128x68xf32>
    %12 = vector.extract_strided_slice %11 {offsets = [0, 0], sizes = [128, 32], strides = [1, 1]} : vector<128x68xf32> to vector<128x32xf32>
    %13 = math.tanh %12 : vector<128x32xf32>
    %14 = vector.extract_strided_slice %11 {offsets = [0, 32], sizes = [128, 32], strides = [1, 1]} : vector<128x68xf32> to vector<128x32xf32>
    %15 = math.tanh %14 : vector<128x32xf32>
    %16 = vector.extract_strided_slice %11 {offsets = [0, 64], sizes = [128, 2], strides = [1, 1]} : vector<128x68xf32> to vector<128x2xf32>
    %17 = vector.extract_strided_slice %11 {offsets = [0, 66], sizes = [128, 2], strides = [1, 1]} : vector<128x68xf32> to vector<128x2xf32>
    %c2 = arith.constant 2 : index
    %c0_9 = arith.constant 0 : index
    %18 = vector.load %arg4[%c2, %c0_9] : memref<5x68xf32, #tpu.memory_space<vmem>>, vector<1x32xf32>
    %c2_10 = arith.constant 2 : index
    %c32 = arith.constant 32 : index
    %19 = vector.load %arg4[%c2_10, %c32] : memref<5x68xf32, #tpu.memory_space<vmem>>, vector<1x1xf32>
    %20 = vector.broadcast %18 : vector<1x32xf32> to vector<128x32xf32>
    %21 = arith.mulf %13, %20 : vector<128x32xf32>
    %cst_11 = arith.constant dense<0.000000e+00> : vector<128xf32>
    %22 = vector.multi_reduction <add>, %21, %cst_11 [1] : vector<128x32xf32> to vector<128xf32>
    %23 = vector.shape_cast %22 : vector<128xf32> to vector<128x1xf32>
    %24 = vector.broadcast %19 : vector<1x1xf32> to vector<128x1xf32>
    %25 = arith.addf %23, %24 : vector<128x1xf32>
    %cst_12 = arith.constant dense<0xFF800000> : vector<128xf32>
    %26 = vector.multi_reduction <maximumf>, %16, %cst_12 [1] : vector<128x2xf32> to vector<128xf32>
    %27 = vector.shape_cast %26 : vector<128xf32> to vector<128x1xf32>
    %28 = vector.broadcast %27 : vector<128x1xf32> to vector<128x2xf32>
    %29 = arith.subf %16, %28 : vector<128x2xf32>
    %30 = math.exp %29 : vector<128x2xf32>
    %cst_13 = arith.constant dense<0.000000e+00> : vector<128xf32>
    %31 = vector.multi_reduction <add>, %30, %cst_13 [1] : vector<128x2xf32> to vector<128xf32>
    %32 = vector.shape_cast %31 : vector<128xf32> to vector<128x1xf32>
    %33 = vector.broadcast %32 : vector<128x1xf32> to vector<128x2xf32>
    %34 = arith.divf %30, %33 : vector<128x2xf32>
    %c3 = arith.constant 3 : index
    %c0_14 = arith.constant 0 : index
    %35 = vector.load %arg4[%c3, %c0_14] : memref<5x68xf32, #tpu.memory_space<vmem>>, vector<1x2xf32>
    %c3_15 = arith.constant 3 : index
    %c2_16 = arith.constant 2 : index
    %36 = vector.load %arg4[%c3_15, %c2_16] : memref<5x68xf32, #tpu.memory_space<vmem>>, vector<1x1xf32>
    %37 = math.tanh %34 : vector<128x2xf32>
    %38 = vector.broadcast %35 : vector<1x2xf32> to vector<128x2xf32>
    %39 = arith.mulf %37, %38 : vector<128x2xf32>
    %cst_17 = arith.constant dense<0.000000e+00> : vector<128xf32>
    %40 = vector.multi_reduction <add>, %39, %cst_17 [1] : vector<128x2xf32> to vector<128xf32>
    %41 = vector.shape_cast %40 : vector<128xf32> to vector<128x1xf32>
    %42 = vector.broadcast %36 : vector<1x1xf32> to vector<128x1xf32>
    %43 = arith.addf %41, %42 : vector<128x1xf32>
    %44 = arith.mulf %43, %25 : vector<128x1xf32>
    %45 = vector.broadcast %44 : vector<128x1xf32> to vector<128x32xf32>
    %46 = arith.mulf %45, %15 : vector<128x32xf32>
    %47 = vector.shape_cast %46 : vector<128x32xf32> to vector<16x8x32xf32>
    %cst_18 = arith.constant dense<0.000000e+00> : vector<16x32xf32>
    %48 = vector.multi_reduction <add>, %47, %cst_18 [1] : vector<16x8x32xf32> to vector<16x32xf32>
    %49 = vector.shape_cast %6 : vector<128x32xf32> to vector<16x8x32xf32>
    %50 = vector.extract_strided_slice %49 {offsets = [0, 7, 0], sizes = [16, 1, 32], strides = [1, 1, 1]} : vector<16x8x32xf32> to vector<16x1x32xf32>
    %51 = vector.shape_cast %50 : vector<16x1x32xf32> to vector<16x32xf32>
    %52 = arith.mulf %48, %51 : vector<16x32xf32>
    %cst_19 = arith.constant dense<0.000000e+00> : vector<16xf32>
    %53 = vector.multi_reduction <add>, %52, %cst_19 [1] : vector<16x32xf32> to vector<16xf32>
    %54 = vector.shape_cast %53 : vector<16xf32> to vector<16x1xf32>
    %55 = vector.shape_cast %17 : vector<128x2xf32> to vector<16x8x2xf32>
    %56 = vector.extract_strided_slice %55 {offsets = [0, 7, 0], sizes = [16, 1, 2], strides = [1, 1, 1]} : vector<16x8x2xf32> to vector<16x1x2xf32>
    %57 = vector.shape_cast %56 : vector<16x1x2xf32> to vector<16x2xf32>
    %c4 = arith.constant 4 : index
    %c0_20 = arith.constant 0 : index
    %58 = vector.load %arg4[%c4, %c0_20] : memref<5x68xf32, #tpu.memory_space<vmem>>, vector<1x2xf32>
    %59 = vector.broadcast %54 : vector<16x1xf32> to vector<16x2xf32>
    %60 = vector.broadcast %58 : vector<1x2xf32> to vector<16x2xf32>
    %61 = arith.mulf %59, %60 : vector<16x2xf32>
    %62 = arith.addf %61, %57 : vector<16x2xf32>
    %cst_21 = arith.constant dense<0xFF800000> : vector<16xf32>
    %63 = vector.multi_reduction <maximumf>, %62, %cst_21 [1] : vector<16x2xf32> to vector<16xf32>
    %64 = vector.shape_cast %63 : vector<16xf32> to vector<16x1xf32>
    %65 = vector.broadcast %64 : vector<16x1xf32> to vector<16x2xf32>
    %66 = arith.subf %62, %65 : vector<16x2xf32>
    %67 = math.exp %66 : vector<16x2xf32>
    %cst_22 = arith.constant dense<0.000000e+00> : vector<16xf32>
    %68 = vector.multi_reduction <add>, %67, %cst_22 [1] : vector<16x2xf32> to vector<16xf32>
    %69 = vector.shape_cast %68 : vector<16xf32> to vector<16x1xf32>
    %70 = vector.broadcast %69 : vector<16x1xf32> to vector<16x2xf32>
    %71 = arith.divf %67, %70 : vector<16x2xf32>
    %c0_23 = arith.constant 0 : index
    %c0_24 = arith.constant 0 : index
    %72 = vector.load %arg5[%c0_23, %c0_24] : memref<16x2xf32, #tpu.memory_space<vmem>>, vector<16x2xf32>
    tpu.vector_store %arg5[%c0_23, %c0_24], %71 {strides = array<i32>} : memref<16x2xf32, #tpu.memory_space<vmem>>, vector<16x2xf32>,
    return
  }
  func.func @transform_0(%arg0: i32) -> (i32, i32) {
    %c0_i32 = arith.constant 0 : i32
    %c0_i32_0 = arith.constant 0 : i32
    return %arg0, %c0_i32 : i32, i32
  }
  func.func @transform_1(%arg0: i32) -> (i32, i32) {
    %c0_i32 = arith.constant 0 : i32
    %c0_i32_0 = arith.constant 0 : i32
    %c0_i32_1 = arith.constant 0 : i32
    return %c0_i32, %c0_i32_0 : i32, i32
  }
  func.func @transform_2(%arg0: i32) -> (i32, i32) {
    %c0_i32 = arith.constant 0 : i32
    %c0_i32_0 = arith.constant 0 : i32
    %c0_i32_1 = arith.constant 0 : i32
    return %c0_i32, %c0_i32_0 : i32, i32
  }
  func.func @transform_3(%arg0: i32) -> (i32, i32) {
    %c0_i32 = arith.constant 0 : i32
    %c0_i32_0 = arith.constant 0 : i32
    %c0_i32_1 = arith.constant 0 : i32
    return %c0_i32, %c0_i32_0 : i32, i32
  }
  func.func @transform_4(%arg0: i32) -> (i32, i32) {
    %c0_i32 = arith.constant 0 : i32
    %c0_i32_0 = arith.constant 0 : i32
    return %arg0, %c0_i32 : i32, i32
  }
}

</mosaic_0001>

<bundles_post_ra>
// kernel: temporal_forward.1
= control target key start
LH: loop header
LB: loop body
LE: loop exit
PB: predicated region body
PF: predicated region fallthrough
CT: control target
= control target key end

     0   :  { %9 = vsyncpa [#allocation3], 0  ;;  %s3247_s0 = inlined_call_operand.hbm [shape: f32[256,32], index: 0, kind: input, shape index: {}]   ;;  %s3248_s1 = inlined_call_operand.hbm [shape: f32[32,32], index: 1, kind: input, shape index: {}]   ;;  %s3249_s2 = inlined_call_operand.hbm [shape: f32[32,68], index: 2, kind: input, shape index: {}]   ;;  %s3250_s3 = inlined_call_operand.vmem [shape: f32[5,68], index: 3, kind: input, shape index: {}]   ;;  %s3251_s4 = inlined_call_operand.vmem [shape: f32[32,2], index: 4, kind: output, shape index: {}]  }
   0x1   :  { %11 = vsyncpa [#allocation3 + $0x1], 0 }
   0x2   :  { %12 = vsyncpa [#allocation5], 0  ;;  %s2375_s15 = smov 0   ;;  %s2377_s16 = smov 0  }
   0x3   :  { %s2379_s17 = smov 0   ;;  %s2381_s18 = smov 0  }
   0x4 LB: > { %s1799_s19 = sadd.s32 4294967295, %s2337_s18   ;;  %p38_p0 = scmp.ne.s32.totalorder %s2329_s16, %s2325_s15  ;;  %s2337_s18 = sphi %s2381_s18, %s3342_s18   ;;  %s2333_s17 = sphi %s2379_s17, %s3341_s17   ;;  %s2329_s16 = sphi %s2377_s16, %s3340_s16   ;;  %s2325_s15 = sphi %s2375_s15, %s3339_s15  }
   0x5   : > { %p2397_p1 = scmp.eq.s32.totalorder %s1799_s19, 0  ;;  %p1801_p2 = scmp.ge.s32.totalorder %s2337_s18, 1 }
   0x6   : > { %p138_p3 = scmp.lt.s32.totalorder %s2337_s18, 3  ;;  %s2339_s23 = smov [#allocation4]  }
   0x7   : > { %s3281_s20 = scalar_select %p2397_p1, 1, 0 }
   0x8   : > { %p2405_p4 = por %p2397_p1, %p38_p0  ;;  %p2409_p5 = pnand %p1801_p2, %p138_p3 }
   0x9   : > { %s150_s24 = sshll.u32 %s2339_s23, 4  ;;  %s2340_s26 = smov [#allocation6]   ;;  %s151_s24 = int_to_ptr.vmem [resolvable:$true] %s150_s24 }
   0xa   : > { %s3282_s21 = scalar_select %p2405_p4, 1, 0 }
   0xb   : > { %s3283_s22 = scalar_select %p2409_p5, 1, 0 }
   0xc   : > { %p1984_p6 = pneg %p2409_p5  ;;  %s163_s27 = sshll.u32 %s2340_s26, 4  ;;  %s2421_s27 = int_to_ptr.vmem [resolvable:$true] %s163_s27 }
   0xd   : > { %s2213_s30 = scalar_lea.hbm %s3248_s1, 512 }
   0xe   : > { %p2417_p7 = pnand %p1984_p6, %p2397_p1  ;;  %p2214_p8 = scmp.ne.s32.totalorder %s3248_s1, %s2213_s30 }
   0xf   : > { %p2220_p12 = scmp.lt.u32.totalorder %s2213_s30, %s3248_s1 }
  0x10   : > { %p2215_p9 = pneg %p2417_p7 }
  0x12   : > { %p2216_p10 = pnand %p2215_p9, %p2214_p8 }
  0x14   : > { %p2217_p11 = pneg %p2216_p10 }
  0x16   : > { %p2222_p13 = pnand %p2220_p12, %p2217_p11 }
  0x18   : > { %2225 = shalt.err (!%p2222_p13)
}
  0x19   : > { %s2226_s9 = scalar_lea.vmem %s151_s24, 512  ;;  %p2234_p6 = scmp.lt.s32.totalorder %s151_s24, %s151_s24 }
  0x1a   : > { %p2227_p0 = scmp.ne.s32.totalorder %s151_s24, %s2226_s9  ;;  %p2235_p1 = scmp.lt.s32.totalorder %s2226_s9, %s2226_s9 }
  0x1c   : > { %p2229_p2 = pnand %p2227_p0, %p2215_p9  ;;  %p2236_p4 = por %p2235_p1, %p2234_p6 }
  0x1e   : > { %p2230_p3 = pneg %p2229_p2 }
  0x20   : > { %p2237_p5 = pnand %p2236_p4, %p2230_p3 }
  0x22   : > { %2240 = shalt.err (!%p2237_p5)
}
  0x23   : > { %s2341_s10 = smov 128   ;;  %s2342_s11 = smov 8  }
  0x24   : > { %1987 = dma.hbm_to_vmem [thread:$0]  (!%p2417_p7), %s3248_s1, 512, %s151_s24, [#allocation5], %s2341_s10, %s2341_s10, %s2342_s11  }
  0x25   : > { %s2241_s23 = scalar_lea.hbm %s3249_s2, 512 }
  0x26   : > { %p2242_p1 = scmp.ne.s32.totalorder %s3249_s2, %s2241_s23  ;;  %p2248_p8 = scmp.lt.u32.totalorder %s2241_s23, %s3249_s2 }
  0x28   : > { %p2244_p4 = pnand %p2242_p1, %p2215_p9 }
  0x2a   : > { %p2245_p5 = pneg %p2244_p4 }
  0x2c   : > { %p2250_p10 = pnand %p2248_p8, %p2245_p5 }
  0x2e   : > { %2253 = shalt.err (!%p2250_p10)
}
  0x2f   : > { %s2254_s24 = scalar_lea.vmem %s2421_s27, 512  ;;  %p2262_p0 = scmp.lt.s32.totalorder %s2421_s27, %s2421_s27 }
  0x30   : > { %p2255_p11 = scmp.ne.s32.totalorder %s2421_s27, %s2254_s24  ;;  %p2263_p2 = scmp.lt.s32.totalorder %s2254_s24, %s2254_s24 }
  0x32   : > { %p2257_p12 = pnand %p2255_p11, %p2215_p9  ;;  %p2264_p3 = por %p2263_p2, %p2262_p0 }
  0x34   : > { %p2258_p13 = pneg %p2257_p12 }
  0x36   : > { %p2265_p6 = pnand %p2264_p3, %p2258_p13 }
  0x38   : > { %2268 = shalt.err (!%p2265_p6)
}
  0x39   : > { %1990 = dma.hbm_to_vmem [thread:$0]  (!%p2417_p7), %s3249_s2, 512, %s2421_s27, [#allocation5], %s2341_s10, %s2341_s10, %s2342_s11  }
  0x3a   : > { %s2477_s7 = sadd.s32 1, %s2337_s18   ;;  %s25_s25 = sadd.s32 1, %s2333_s17 }
  0x3b   : > { %s22_s8 = ssub.s32 %s2337_s18, %s2477_s7  ;;  %p32_p9 = scmp.ne.s32.totalorder %s2333_s17, %s2329_s16 }
  0x3c   : > { %p23_p1 = scmp.eq.s32.totalorder %s22_s8, 0  ;;  %p33_p4 = scmp.eq.s32.totalorder %s2337_s18, 0 }
  0x3d   : > { %p1997_p5 = scmp.lt.s32.totalorder %s2337_s18, 2  ;;  %s180_s9 = sand.u32 1, %s2333_s17  }
  0x3e   : > { %s2488_s12 = scalar_select %p23_p1, %s2333_s17, %s25_s25  }
  0x3f   : > { %p34_p8 = por %p33_p4, %p32_p9  ;;  %s1805_s13 = sshll.u32 %s180_s9, 7 }
  0x40   : > { %s1853_s14 = sshll.u32 %s2337_s18, 11  ;;  %s184_s27 = scalar_lea.vmem [#allocation2], %s1805_s13 }
  0x41   : > { %s2494_s26 = scalar_lea.hbm %s3247_s0, %s1853_s14  ;;  %s191_s28 = sshll.u32 %s184_s27, 4  ;;  %s2500_s28 = int_to_ptr.vmem [resolvable:$true] %s191_s28 }
  0x42   : > { %p2496_p7 = pnand %p1997_p5, %p34_p8  ;;  %s2502_s30 = scalar_lea.sflag [#allocation3], %s180_s9 }
  0x43   : > { %s2269_s24 = scalar_lea.hbm %s2494_s26, 2048  ;;  %s2274_s25 = scalar_lea.hbm %s3247_s0, 4096 }
  0x44   : > { %p2270_p10 = scmp.ne.s32.totalorder %s2494_s26, %s2269_s24  ;;  %p2271_p11 = pneg %p2496_p7 }
  0x45   : > { %p2275_p0 = scmp.lt.u32.totalorder %s2494_s26, %s3247_s0  ;;  %p2276_p2 = scmp.lt.u32.totalorder %s2274_s25, %s2269_s24 }
  0x46   : > { %p2272_p12 = pnand %p2271_p11, %p2270_p10  ;;  %p2278_p6 = scmp.lt.u32.totalorder %s2269_s24, %s2494_s26 }
  0x47   : > { %p2277_p3 = por %p2276_p2, %p2275_p0 }
  0x48   : > { %p2273_p13 = pneg %p2272_p12 }
  0x49   : > { %p2279_p9 = por %p2278_p6, %p2277_p3 }
  0x4b   : > { %p2280_p1 = pnand %p2279_p9, %p2273_p13 }
  0x4d   : > { %2283 = shalt.err (!%p2280_p1)
}
  0x4e   : > { %s2284_s9 = scalar_lea.vmem %s2500_s28, 2048  ;;  %s2343_s14 = smov [#allocation2]  }
  0x4f   : > { %p2285_p4 = scmp.ne.s32.totalorder %s2500_s28, %s2284_s9  ;;  %s2289_s15 = sshll.u32 %s2343_s14, 4  ;;  %s2290_s15 = int_to_ptr.vmem [resolvable:$false] %s2289_s15 }
  0x50   : > { %s2291_s23 = scalar_lea.vmem %s2290_s15, 4096  ;;  %p2292_p10 = scmp.lt.s32.totalorder %s2500_s28, %s2290_s15 }
  0x51   : > { %p2287_p5 = pnand %p2285_p4, %p2271_p11  ;;  %p2293_p12 = scmp.lt.s32.totalorder %s2291_s23, %s2284_s9 }
  0x53   : > { %p2288_p8 = pneg %p2287_p5  ;;  %p2294_p0 = por %p2293_p12, %p2292_p10 }
  0x55   : > { %p2295_p2 = pnand %p2294_p0, %p2288_p8 }
  0x57   : > { %2298 = shalt.err (!%p2295_p2)
}
  0x58   : > { %1994 = dma.hbm_to_vmem [thread:$0]  (!%p2496_p7), %s2494_s26, 2048, %s2500_s28, %s2502_s30, %s2341_s10, %s2341_s10, %s2342_s11  }
  0x59   : > { %p3286_p11 = scmp.ne.s32.totalorder %s3283_s22, 0 }
  0x5b   : > { %203 = sbr.rel (%p3286_p11) target bundleno = 2217 (0x8a9), region = 36 }
  0x62   : > { %s205_s27 = sand.u32 1, %s2329_s16   ;;  %p3287_p13 = scmp.ne.s32.totalorder %s3282_s21, 0 }
  0x63   : > { %s1809_s24 = sshll.u32 %s205_s27, 7  ;;  %s206_s5 = scalar_lea.sflag [#allocation3], %s205_s27 }
  0x64   : > { %s2536_s6 = scalar_lea.vmem [#allocation2], %s1809_s24 }
  0x65   : > { %2316 = dma.done.wait (%p3287_p13), %s206_s5, 2048  }
  0x66   : > { %2318 = vsyncadd (%p3287_p13), %s206_s5, 4294965248  ;;  %p3288_p3 = scmp.ne.s32.totalorder %s3281_s20, 0 }
  0x68   : > { %2320 = dma.done.wait (%p3288_p3), [#allocation5], 1024  }
  0x69   : > { %2322 = vsyncadd (%p3288_p3), [#allocation5], 4294966272  ;;  %vm274_vm0 = vcmask 261120   ;;  %v266_v0 = vld [vmem:[#allocation4] sm:$0xff]  ;;  %v267_v1 = vld [vmem:[#allocation4 + $0x8] sm:$0xff]  ;;  %s2344_s22 = smov 64  }
  0x6a   : > { %v268_v2 = vld [vmem:[#allocation4 + $0x10] sm:$0xff]  ;;  %v1958_v3 = vpack.c.bf16 %v267_v1, %v266_v0  ;;  %v269_v4 = vld [vmem:[#allocation4 + $0x18] sm:$0xff]  ;;  %v249_v5 = vld [vmem:[%s2536_s6] sm:$0xff]  ;;  %vm787_vm1 = vcmask 540160   ;;  %vm948_vm2 = vcmask 15360   ;;  %s2345_s25 = smov 98  }
  0x6b   : > { %v1962_v6 = vpack.c.bf16 %v269_v4, %v268_v2  ;;  %1902 = vmatprep.mubr.msk.f32.mxu0 %vm274_vm0, %v249_v5  ;;  %v250_v7 = vld [vmem:[%s2536_s6 + $0x8] sm:$0xff]  ;;  %v251_v8 = vld [vmem:[%s2536_s6 + $0x10] sm:$0xff]  ;;  %v252_v9 = vld [vmem:[%s2536_s6 + $0x18] sm:$0xff]  ;;  %s2346_s8 = smov 32   ;;  %vm1374_vm3 = vcmask 523520   ;;  %vm1584_vm4 = vcmask 1041409  }
  0x6c   : > { %1959 = vmatprep.subr.bf16.mxu0 %v1958_v3  ;;  %v253_v10 = vld [vmem:[%s2536_s6 + $0x20] sm:$0xff]  ;;  %v254_v11 = vld [vmem:[%s2536_s6 + $0x28] sm:$0xff]  ;;  %v255_v12 = vld [vmem:[%s2536_s6 + $0x30] sm:$0xff]  ;;  %vm1587_vm5 = vcmask 1042434   ;;  %vm1590_vm6 = vcmask 1043459   ;;  %vm1593_vm7 = vcmask 1044484  }
  0x6d   : > { %1961 = vmatpush3.bf16.msra.mxu0 %v1958_v3  ;;  %v256_v13 = vld [vmem:[%s2536_s6 + $0x38] sm:$0xff]  ;;  %v257_v14 = vld [vmem:[%s2536_s6 + $0x40] sm:$0xff]  ;;  %v258_v15 = vld [vmem:[%s2536_s6 + $0x48] sm:$0xff]  ;;  %vm1596_vm8 = vcmask 1045509   ;;  %vm1599_vm9 = vcmask 1046534   ;;  %vm1602_vm10 = vcmask 1047559  }
  0x6e   : > { %1963 = vmatprep.subr.bf16.mxu0 %v1962_v6  ;;  %v259_v16 = vld [vmem:[%s2536_s6 + $0x50] sm:$0xff]  ;;  %v260_v17 = vld [vmem:[%s2536_s6 + $0x58] sm:$0xff]  ;;  %v261_v18 = vld [vmem:[%s2536_s6 + $0x60] sm:$0xff]  ;;  %s2348_s14 = smov 96   ;;  %s2349_s15 = smov 62  }
  0x6f   : > { %v262_v19 = vld [vmem:[%s2536_s6 + $0x68] sm:$0xff]  ;;  %v263_v20 = vld [vmem:[%s2536_s6 + $0x70] sm:$0xff]  ;;  %v264_v21 = vld [vmem:[%s2536_s6 + $0x78] sm:$0xff]  ;;  %s1812_s24 = sshll.u32 %s1799_s19, 1 }
  0x70   : > { %v484_v22 = vld [vmem:[#allocation6] sm:$0xff]  ;;  %v485_v23 = vld [vmem:[#allocation6 + $0x8] sm:$0xff]  ;;  %v486_v25 = vld [vmem:[#allocation6 + $0x10] sm:$0xff]  ;;  %p244_p7 = scmp.lt.s32.totalorder %s1812_s24, 3 }
  0x71   : > { %1965 = vmatpush3.bf16.msra.mxu0 %v1962_v6  ;;  %v1966_v24 = vpack.c.bf16 %v485_v23, %v484_v22  ;;  %v487_v26 = vld [vmem:[#allocation6 + $0x18] sm:$0xff]  ;;  %v1849_v28 = vld [vmem:[%s3250_s3 + $0x3] ss:$0 sm:$0xff]  ;;  %v2585_v29 = vld [vmem:[%s3250_s3] ss:$0 sm:$0xff] }
  0x72   : > { %v1970_v27 = vpack.c.bf16 %v487_v26, %v486_v25  ;;  %1051 = vrot.lane.b32.xlu0 %v1849_v28, %s2344_s22  ;;  %s3344_s24 = smov (!%p244_p7, %s1812_s24), 3 }
  0x73   : > { %1967 = vmatprep.subr.bf16.mxu1 %v1966_v24  ;;  %s1813_s5 = sshll.u32 %s3344_s24, 3 }
  0x74   : > { %1903 = vmatmul.mubr.msk.f32.vlgmr.msra.gmra.mrb[0].mxu0 %vm274_vm0, %v250_v7  ;;  %1969 = vmatpush3.bf16.msra.mxu1 %v1966_v24  ;;  %s247_s21 = scalar_lea.vmem %s3251_s4, %s1813_s5 }
  0x75   : > { %1905 = vmatprep.mubr.msk.f32.mxu0 %vm274_vm0, %v251_v8  ;;  %1971 = vmatprep.subr.bf16.mxu1 %v1970_v27 }
  0x78   : > { %1906 = vmatmul.mubr.msk.f32.gmra.mrb[2].mxu0 %vm274_vm0, %v252_v9  ;;  %1973 = vmatpush3.bf16.msra.mxu1 %v1970_v27 }
  0x79   : > { %1908 = vmatprep.mubr.msk.f32.mxu0 %vm274_vm0, %v253_v10 }
  0x7c   : > { %1909 = vmatmul.mubr.msk.f32.gmra.mrb[4].mxu0 %vm274_vm0, %v254_v11 }
  0x7d   : > { %1911 = vmatprep.mubr.msk.f32.mxu0 %vm274_vm0, %v255_v12 }
  0x80   : > { %1912 = vmatmul.mubr.msk.f32.gmra.mrb[6].mxu0 %vm274_vm0, %v256_v13 }
  0x81   : > { %1914 = vmatprep.mubr.msk.f32.mxu0 %vm274_vm0, %v257_v14  ;;  %v2670_v14 = vld [vmem:[%s3250_s3 + $0x1] ss:$0 sm:$0xff] }
  0x84   : > { %1915 = vmatmul.mubr.msk.f32.gmra.mrb[8].mxu0 %vm274_vm0, %v258_v15 }
  0x85   : > { %1917 = vmatprep.mubr.msk.f32.mxu0 %vm274_vm0, %v259_v16 }
  0x88   : > { %1918 = vmatmul.mubr.msk.f32.gmra.mrb[10].mxu0 %vm274_vm0, %v260_v17 }
  0x89   : > { %1920 = vmatprep.mubr.msk.f32.mxu0 %vm274_vm0, %v261_v18 }
  0x8c   : > { %1921 = vmatmul.mubr.msk.f32.gmra.mrb[12].mxu0 %vm274_vm0, %v262_v19 }
  0x8d   : > { %1923 = vmatprep.mubr.msk.f32.mxu0 %vm274_vm0, %v263_v20 }
  0x90   : > { %1924 = vmatmul.mubr.msk.f32.gmra.mrb[14].mxu0 %vm274_vm0, %v264_v21 }
 0x147   : > { %v1904_v30 = vpop.f32.mrb[0].mxu0 }
 0x148   : > { %v395_v31 = vadd.f32 %v1904_v30, %v2585_v29  ;;  %v389_v32 = vpop.f32.mrb[1].mxu0 }
 0x149   : > { %v390_v33 = vadd.f32 %v2585_v29, %v389_v32 }
 0x14b   : > { %2044 = vtanh.f32 %v390_v33  ;;  %v1907_v34 = vpop.f32.mrb[2].mxu0 }
 0x14c   : > { %2046 = vtanh.f32 %v395_v31  ;;  %v405_v35 = vadd.f32 %v1907_v34, %v2585_v29  ;;  %v399_v36 = vpop.f32.mrb[3].mxu0 }
 0x14d   : > { %v400_v37 = vadd.f32 %v2585_v29, %v399_v36 }
 0x14f   : > { %2048 = vtanh.f32 %v400_v37  ;;  %v1910_v38 = vpop.f32.mrb[4].mxu0 }
 0x150   : > { %2050 = vtanh.f32 %v405_v35  ;;  %v415_v39 = vadd.f32 %v1910_v38, %v2585_v29  ;;  %v409_v40 = vpop.f32.mrb[5].mxu0 }
 0x151   : > { %v410_v41 = vadd.f32 %v2585_v29, %v409_v40  ;;  %v2717_v40 = vld [vmem:[%s3250_s3 + $0x2] ss:$0 sm:$0xff] }
 0x153   : > { %2052 = vtanh.f32 %v410_v41  ;;  %v1913_v42 = vpop.f32.mrb[6].mxu0 }
 0x154   : > { %2054 = vtanh.f32 %v415_v39  ;;  %v425_v43 = vadd.f32 %v1913_v42, %v2585_v29  ;;  %v419_v44 = vpop.f32.mrb[7].mxu0 }
 0x155   : > { %v2594_v45 = vpop.eup %2044  ;;  %v420_v46 = vadd.f32 %v2585_v29, %v419_v44 }
 0x156   : > { %v2597_v47 = vpop.eup %2046  ;;  %1934 = vmatprep.mubr.msk.f32.mxu1 %vm274_vm0, %v2594_v45 }
 0x157   : > { %2056 = vtanh.f32 %v420_v46  ;;  %v1916_v48 = vpop.f32.mrb[8].mxu0  ;;  %1935 = vmatmul.mubr.msk.f32.vlgmr.msra.gmra.mrb[0].mxu1 %vm274_vm0, %v2597_v47 }
 0x158   : > { %2058 = vtanh.f32 %v425_v43  ;;  %v435_v49 = vadd.f32 %v1916_v48, %v2585_v29  ;;  %v429_v50 = vpop.f32.mrb[9].mxu0 }
 0x159   : > { %v2604_v51 = vpop.eup %2048  ;;  %v430_v52 = vadd.f32 %v2585_v29, %v429_v50 }
 0x15a   : > { %v2607_v53 = vpop.eup %2050  ;;  %2060 = vtanh.f32 %v435_v49  ;;  %1937 = vmatprep.mubr.msk.f32.mxu1 %vm274_vm0, %v2604_v51 }
 0x15b   : > { %2062 = vtanh.f32 %v430_v52  ;;  %v1919_v54 = vpop.f32.mrb[10].mxu0  ;;  %1938 = vmatmul.mubr.msk.f32.gmra.mrb[2].mxu1 %vm274_vm0, %v2607_v53 }
 0x15c   : > { %v445_v55 = vadd.f32 %v1919_v54, %v2585_v29  ;;  %v439_v56 = vpop.f32.mrb[11].mxu0 }
 0x15d   : > { %v2614_v57 = vpop.eup %2052  ;;  %v440_v58 = vadd.f32 %v2585_v29, %v439_v56 }
 0x15e   : > { %v2617_v59 = vpop.eup %2054  ;;  %2064 = vtanh.f32 %v445_v55  ;;  %1940 = vmatprep.mubr.msk.f32.mxu1 %vm274_vm0, %v2614_v57 }
 0x15f   : > { %2066 = vtanh.f32 %v440_v58  ;;  %v1922_v60 = vpop.f32.mrb[12].mxu0  ;;  %1941 = vmatmul.mubr.msk.f32.gmra.mrb[4].mxu1 %vm274_vm0, %v2617_v59 }
 0x160   : > { %v455_v61 = vadd.f32 %v1922_v60, %v2585_v29  ;;  %v449_v62 = vpop.f32.mrb[13].mxu0 }
 0x161   : > { %v2624_v63 = vpop.eup %2056  ;;  %v450_v0 = vadd.f32 %v2585_v29, %v449_v62 }
 0x162   : > { %v2627_v1 = vpop.eup %2058  ;;  %2068 = vtanh.f32 %v455_v61  ;;  %1943 = vmatprep.mubr.msk.f32.mxu1 %vm274_vm0, %v2624_v63 }
 0x163   : > { %2070 = vtanh.f32 %v450_v0  ;;  %v1925_v2 = vpop.f32.mrb[14].mxu0  ;;  %1944 = vmatmul.mubr.msk.f32.gmra.mrb[6].mxu1 %vm274_vm0, %v2627_v1 }
 0x164   : > { %v2633_v3 = vpop.eup %2060  ;;  %v465_v4 = vadd.f32 %v1925_v2, %v2585_v29  ;;  %v459_v5 = vpop.f32.mrb[15].mxu0 }
 0x165   : > { %v2636_v6 = vpop.eup %2062  ;;  %v460_v7 = vadd.f32 %v2585_v29, %v459_v5 }
 0x166   : > { %2072 = vtanh.f32 %v465_v4  ;;  %1946 = vmatprep.mubr.msk.f32.mxu1 %vm274_vm0, %v2636_v6 }
 0x167   : > { %2074 = vtanh.f32 %v460_v7  ;;  %1947 = vmatmul.mubr.msk.f32.gmra.mrb[8].mxu1 %vm274_vm0, %v2633_v3 }
 0x168   : > { %v2643_v8 = vpop.eup %2064 }
 0x169   : > { %v2645_v9 = vpop.eup %2066 }
 0x16a   : > { %1949 = vmatprep.mubr.msk.f32.mxu1 %vm274_vm0, %v2645_v9 }
 0x16b   : > { %1950 = vmatmul.mubr.msk.f32.gmra.mrb[10].mxu1 %vm274_vm0, %v2643_v8 }
 0x16c   : > { %v2651_v10 = vpop.eup %2068 }
 0x16d   : > { %v2653_v11 = vpop.eup %2070 }
 0x16e   : > { %1952 = vmatprep.mubr.msk.f32.mxu1 %vm274_vm0, %v2653_v11 }
 0x16f   : > { %1953 = vmatmul.mubr.msk.f32.gmra.mrb[12].mxu1 %vm274_vm0, %v2651_v10 }
 0x170   : > { %v2659_v12 = vpop.eup %2072 }
 0x171   : > { %v2661_v13 = vpop.eup %2074 }
 0x172   : > { %1955 = vmatprep.mubr.msk.f32.mxu1 %vm274_vm0, %v2661_v13 }
 0x173   : > { %1956 = vmatmul.mubr.msk.f32.gmra.mrb[14].mxu1 %vm274_vm0, %v2659_v12 }
 0x22a   : > { %v1936_v15 = vpop.f32.mrb[0].mxu1 }
 0x22b   : > { %v2673_v16 = vadd.f32 %v1936_v15, %v2670_v14  ;;  %v607_v17 = vpop.f32.mrb[1].mxu1 }
 0x22c   : > { %v2676_v18 = vadd.f32 %v2670_v14, %v607_v17 }
 0x22d   : > { %3289 = vst [vmem:[#allocation9_spill] sm:$0xff] %v2673_v16  ;;  %v791_v19 = vsel %vm787_vm1, %v2673_v16, -inf  ;;  %2076 = vtanh.f32 %v2673_v16 }
 0x22e   : > { %3290 = vst [vmem:[#allocation10_spill] sm:$0xff] %v2676_v18  ;;  %792 = vmax.xlane.f32.xlu0 %v791_v19  ;;  %v1939_v20 = vpop.f32.mrb[2].mxu1  ;;  %v788_v21 = vsel %vm787_vm1, %v2676_v18, -inf }
 0x22f   : > { %v2683_v22 = vadd.f32 %v1939_v20, %v2670_v14  ;;  %v617_v23 = vpop.f32.mrb[3].mxu1  ;;  %789 = vmax.xlane.f32.xlu1 %v788_v21 }
 0x230   : > { %v2687_v24 = vadd.f32 %v2670_v14, %v617_v23 }
 0x231   : > { %3291 = vst [vmem:[#allocation11_spill] sm:$0xff] %v2683_v22  ;;  %v797_v25 = vsel %vm787_vm1, %v2683_v22, -inf }
 0x232   : > { %3292 = vst [vmem:[#allocation12_spill] sm:$0xff] %v2687_v24  ;;  %2078 = vtanh.f32 %v2687_v24  ;;  %798 = vmax.xlane.f32.xlu0 %v797_v25  ;;  %v1942_v26 = vpop.f32.mrb[4].mxu1  ;;  %v794_v30 = vsel %vm787_vm1, %v2687_v24, -inf }
 0x233   : > { %v2693_v27 = vadd.f32 %v1942_v26, %v2670_v14  ;;  %v627_v28 = vpop.f32.mrb[5].mxu1  ;;  %2080 = vtanh.f32 %v2683_v22 }
 0x234   : > { %v2696_v29 = vadd.f32 %v2670_v14, %v627_v28  ;;  %2082 = vtanh.f32 %v2676_v18 }
 0x235   : > { %3293 = vst [vmem:[#allocation13_spill] sm:$0xff] %v2693_v27  ;;  %v803_v31 = vsel %vm787_vm1, %v2693_v27, -inf }
 0x236   : > { %3294 = vst [vmem:[#allocation14_spill] sm:$0xff] %v2696_v29  ;;  %v1945_v32 = vpop.f32.mrb[6].mxu1  ;;  %795 = vmax.xlane.f32.xlu0 %v794_v30  ;;  %804 = vmax.xlane.f32.xlu1 %v803_v31  ;;  %v800_v36 = vsel %vm787_vm1, %v2696_v29, -inf }
 0x237   : > { %v2703_v33 = vadd.f32 %v1945_v32, %v2670_v14  ;;  %v637_v34 = vpop.f32.mrb[7].mxu1  ;;  %v2712_v38 = vpop.eup %2076 }
 0x238   : > { %v2706_v35 = vadd.f32 %v2670_v14, %v637_v34  ;;  %v708_v46 = vmul.f32 %v2712_v38, %v2717_v40 }
 0x239   : > { %v809_v37 = vsel %vm787_vm1, %v2703_v33, -inf }
 0x23a   : > { %3295 = vst [vmem:[#allocation15_spill] sm:$0xff] %v2706_v35  ;;  %801 = vmax.xlane.f32.xlu0 %v800_v36  ;;  %810 = vmax.xlane.f32.xlu1 %v809_v37  ;;  %v1948_v39 = vpop.f32.mrb[8].mxu1  ;;  %v806_v43 = vsel %vm787_vm1, %v2706_v35, -inf  ;;  %v726_v55 = vsel %vm274_vm0, %v708_v46, 0.0 }
 0x23b   : > { %v647_v41 = vpop.f32.mrb[9].mxu1  ;;  %v2733_v54 = vadd.f32 %v1948_v39, %v2670_v14 }
 0x23c   : > { %v2719_v42 = vpop.eup %2078  ;;  %v2739_v58 = vadd.f32 %v2670_v14, %v647_v41 }
 0x23d   : > { %3296 = vst [vmem:[#allocation16_spill] sm:$0xff] %v2719_v42  ;;  %v709_v44 = vmul.f32 %v2719_v42, %v2717_v40  ;;  %3298 = vst [vmem:[#allocation18_spill] sm:$0xff] %v2733_v54  ;;  %v815_v0 = vsel %vm787_vm1, %v2733_v54, -inf  ;;  %v2753_v15 = vpop.eup %2080 }
 0x23e   : > { %807 = vmax.xlane.f32.xlu1 %v806_v43  ;;  %v1951_v48 = vpop.f32.mrb[10].mxu1  ;;  %3299 = vst [vmem:[#allocation19_spill] sm:$0xff] %v2739_v58  ;;  %2084 = vtanh.f32 %v2739_v58  ;;  %3302 = vst [vmem:[#allocation22_spill] sm:$0xff] %v2753_v15  ;;  %v812_v17 = vsel %vm787_vm1, %v2739_v58, -inf  ;;  %v710_v21 = vmul.f32 %v2753_v15, %v2717_v40  ;;  %v2772_v26 = vpop.eup %2082 }
 0x23f   : > { %v2729_v49 = vadd.f32 %v1951_v48, %v2670_v14  ;;  %v729_v50 = vsel %vm274_vm0, %v709_v44, 0.0  ;;  %v657_v52 = vpop.f32.mrb[11].mxu1  ;;  %2086 = vtanh.f32 %v2696_v29  ;;  %3304 = vst [vmem:[#allocation24_spill] sm:$0xff] %v2772_v26  ;;  %v707_v36 = vmul.f32 %v2772_v26, %v2717_v40 }
 0x240   : > { %730 = vadd.xlane.f32.xlu0 %v729_v50  ;;  %v2762_v20 = vadd.f32 %v2670_v14, %v657_v52  ;;  %v732_v30 = vsel %vm274_vm0, %v710_v21, 0.0 }
 0x241   : > { %3297 = vst [vmem:[#allocation17_spill] sm:$0xff] %v2729_v49  ;;  %v821_v56 = vsel %vm787_vm1, %v2729_v49, -inf  ;;  %2088 = vtanh.f32 %v2729_v49  ;;  %v723_v41 = vsel %vm274_vm0, %v707_v36, 0.0 }
 0x242   : > { %v1954_v60 = vpop.f32.mrb[12].mxu1  ;;  %727 = vadd.xlane.f32.xlu1 %v726_v55  ;;  %3303 = vst [vmem:[#allocation23_spill] sm:$0xff] %v2762_v20  ;;  %2090 = vtanh.f32 %v2693_v27  ;;  %v818_v25 = vsel %vm787_vm1, %v2762_v20, -inf }
 0x243   : > { %v2742_v61 = vadd.f32 %v1954_v60, %v2670_v14  ;;  %v667_v62 = vpop.f32.mrb[13].mxu1  ;;  %2092 = vtanh.f32 %v2762_v20 }
 0x244   : > { %822 = vmax.xlane.f32.xlu0 %v821_v56  ;;  %v2751_v5 = vadd.f32 %v2670_v14, %v667_v62  ;;  %2094 = vtanh.f32 %v2706_v35 }
 0x245   : > { %3300 = vst [vmem:[#allocation20_spill] sm:$0xff] %v2742_v61  ;;  %v827_v2 = vsel %vm787_vm1, %v2742_v61, -inf  ;;  %2096 = vtanh.f32 %v2742_v61 }
 0x246   : > { %v1957_v4 = vpop.f32.mrb[14].mxu1  ;;  %816 = vmax.xlane.f32.xlu1 %v815_v0  ;;  %3301 = vst [vmem:[#allocation21_spill] sm:$0xff] %v2751_v5  ;;  %v824_v19 = vsel %vm787_vm1, %v2751_v5, -inf  ;;  %2098 = vtanh.f32 %v2733_v54 }
 0x247   : > { %v677_v7 = vpop.f32.mrb[15].mxu1  ;;  %v2768_v23 = vadd.f32 %v1957_v4, %v2670_v14  ;;  %2100 = vtanh.f32 %v2751_v5 }
 0x248   : > { %828 = vmax.xlane.f32.xlu0 %v827_v2  ;;  %v2777_v28 = vadd.f32 %v2670_v14, %v677_v7  ;;  %v2782_v32 = vpop.eup %2084 }
 0x249   : > { %v833_v31 = vsel %vm787_vm1, %v2768_v23, -inf  ;;  %3305 = vst [vmem:[#allocation25_spill] sm:$0xff] %v2782_v32  ;;  %v2789_v37 = vpop.eup %2086  ;;  %v715_v14 = vmul.f32 %v2782_v32, %v2717_v40 }
 0x24a   : > { %813 = vmax.xlane.f32.xlu1 %v812_v17  ;;  %v830_v34 = vsel %vm787_vm1, %v2777_v28, -inf  ;;  %3306 = vst [vmem:[#allocation26_spill] sm:$0xff] %v2789_v37  ;;  %v711_v43 = vmul.f32 %v2789_v37, %v2717_v40 }
 0x24b   : > { %v2794_v39 = vpop.eup %2088  ;;  %v747_v46 = vsel %vm274_vm0, %v715_v14, 0.0 }
 0x24c   : > { %825 = vmax.xlane.f32.xlu0 %v824_v19  ;;  %3307 = vst [vmem:[#allocation27_spill] sm:$0xff] %v2794_v39  ;;  %v2800_v44 = vpop.eup %2090  ;;  %v718_v48 = vmul.f32 %v2794_v39, %v2717_v40  ;;  %v735_v55 = vsel %vm274_vm0, %v711_v43, 0.0 }
 0x24d   : > { %3308 = vst [vmem:[#allocation28_spill] sm:$0xff] %v2800_v44  ;;  %v2805_v50 = vpop.eup %2092  ;;  %v712_v56 = vmul.f32 %v2800_v44, %v2717_v40 }
 0x24e   : > { %819 = vmax.xlane.f32.xlu1 %v818_v25  ;;  %3309 = vst [vmem:[#allocation29_spill] sm:$0xff] %v2805_v50  ;;  %v2807_v52 = vpop.eup %2094  ;;  %v756_v62 = vsel %vm274_vm0, %v718_v48, 0.0  ;;  %v717_v0 = vmul.f32 %v2805_v50, %v2717_v40 }
 0x24f   : > { %3310 = vst [vmem:[#allocation30_spill] sm:$0xff] %v2807_v52  ;;  %v2812_v60 = vpop.eup %2096  ;;  %v738_v4 = vsel %vm274_vm0, %v712_v56, 0.0  ;;  %v713_v7 = vmul.f32 %v2807_v52, %v2717_v40 }
 0x250   : > { %733 = vadd.xlane.f32.xlu0 %v732_v30  ;;  %3311 = vst [vmem:[#allocation31_spill] sm:$0xff] %v2812_v60  ;;  %v2817_v2 = vpop.eup %2098  ;;  %v720_v17 = vmul.f32 %v2812_v60, %v2717_v40  ;;  %v753_v21 = vsel %vm274_vm0, %v717_v0, 0.0 }
 0x251   : > { %3312 = vst [vmem:[#allocation32_spill] sm:$0xff] %v2817_v2  ;;  %v2824_v19 = vpop.eup %2100  ;;  %v741_v25 = vsel %vm274_vm0, %v713_v7, 0.0  ;;  %v716_v30 = vmul.f32 %v2817_v2, %v2717_v40 }
 0x252   : > { %834 = vmax.xlane.f32.xlu1 %v833_v31  ;;  %3313 = vst [vmem:[#allocation33_spill] sm:$0xff] %v2824_v19  ;;  %v762_v31 = vsel %vm274_vm0, %v720_v17, 0.0 }
 0x253   : > { %v750_v36 = vsel %vm274_vm0, %v716_v30, 0.0 }
 0x254   : > { %831 = vmax.xlane.f32.xlu0 %v830_v34  ;;  %v719_v34 = vmul.f32 %v2824_v19, %v2717_v40 }
 0x256   : > { %724 = vadd.xlane.f32.xlu1 %v723_v41  ;;  %v759_v14 = vsel %vm274_vm0, %v719_v34, 0.0  ;;  %v2835_v41 = vpop.permute.xlu0 %1051 }
 0x258   : > { %748 = vadd.xlane.f32.xlu0 %v747_v46 }
 0x25a   : > { %736 = vadd.xlane.f32.xlu1 %v735_v55 }
 0x25c   : > { %757 = vadd.xlane.f32.xlu0 %v756_v62 }
 0x25e   : > { %739 = vadd.xlane.f32.xlu1 %v738_v4 }
 0x260   : > { %754 = vadd.xlane.f32.xlu0 %v753_v21 }
 0x262   : > { %742 = vadd.xlane.f32.xlu1 %v741_v25 }
 0x264   : > { %763 = vadd.xlane.f32.xlu0 %v762_v31 }
 0x266   : > { %751 = vadd.xlane.f32.xlu1 %v750_v36 }
 0x268   : > { %760 = vadd.xlane.f32.xlu0 %v759_v14 }
 0x2bb   : > { %v793_v43 = vpop.xlane.xlu0 %792 }
 0x2bc   : > { %v837_v46 = vsub.f32 %v2673_v16, %v793_v43  ;;  %v790_v48 = vpop.xlane.xlu1 %789 }
 0x2bd   : > { %v836_v55 = vsub.f32 %v2676_v18, %v790_v48 }
 0x2be   : > { %v854_v56 = vmul.f32 1.442695, %v837_v46 }
 0x2bf   : > { %v852_v62 = vmul.f32 1.442695, %v836_v55  ;;  %v799_v0 = vpop.xlane.xlu0 %798 }
 0x2c0   : > { %2102 = vpow2.f32 %v854_v56  ;;  %v839_v4 = vsub.f32 %v2683_v22, %v799_v0 }
 0x2c1   : > { %2104 = vpow2.f32 %v852_v62 }
 0x2c2   : > { %v858_v7 = vmul.f32 1.442695, %v839_v4 }
 0x2c3   : > { %v796_v17 = vpop.xlane.xlu0 %795  ;;  %v805_v21 = vpop.xlane.xlu1 %804 }
 0x2c4   : > { %2106 = vpow2.f32 %v858_v7  ;;  %v838_v25 = vsub.f32 %v2687_v24, %v796_v17  ;;  %v841_v30 = vsub.f32 %v2693_v27, %v805_v21 }
 0x2c6   : > { %v856_v31 = vmul.f32 1.442695, %v838_v25  ;;  %v862_v34 = vmul.f32 1.442695, %v841_v30 }
 0x2c7   : > { %v802_v36 = vpop.xlane.xlu0 %801  ;;  %v811_v14 = vpop.xlane.xlu1 %810 }
 0x2c8   : > { %2108 = vpow2.f32 %v856_v31  ;;  %v840_v43 = vsub.f32 %v2696_v29, %v802_v36  ;;  %v843_v46 = vsub.f32 %v2703_v33, %v811_v14 }
 0x2c9   : > { %2110 = vpow2.f32 %v862_v34 }
 0x2ca   : > { %v2844_v48 = vpop.eup %2102  ;;  %v860_v55 = vmul.f32 1.442695, %v840_v43  ;;  %v866_v0 = vmul.f32 1.442695, %v843_v46 }
 0x2cb   : > { %v2846_v56 = vpop.eup %2104  ;;  %902 = vrot.lane.b32.xlu0 %v2844_v48, %s2344_s22  ;;  %v808_v62 = vpop.xlane.xlu1 %807 }
 0x2cc   : > { %2112 = vpow2.f32 %v860_v55  ;;  %v842_v4 = vsub.f32 %v2706_v35, %v808_v62  ;;  %900 = vrot.lane.b32.xlu1 %v2846_v56, %s2344_s22 }
 0x2cd   : > { %v2853_v7 = vpop.xlane.xlu0 %730  ;;  %2114 = vpow2.f32 %v866_v0 }
 0x2ce   : > { %v2855_v17 = vpop.eup %2106  ;;  %v864_v25 = vmul.f32 1.442695, %v842_v4 }
 0x2cf   : > { %906 = vrot.lane.b32.xlu0 %v2855_v17, %s2344_s22  ;;  %v2859_v21 = vpop.xlane.xlu1 %727 }
 0x2d0   : > { %2116 = vpow2.f32 %v864_v25 }
 0x2d1   : > { %v823_v30 = vpop.xlane.xlu0 %822 }
 0x2d2   : > { %v2861_v31 = vpop.eup %2108  ;;  %v847_v34 = vsub.f32 %v2729_v49, %v823_v30 }
 0x2d3   : > { %v817_v36 = vpop.xlane.xlu1 %816  ;;  %904 = vrot.lane.b32.xlu1 %v2861_v31, %s2344_s22  ;;  %v2867_v46 = vpop.eup %2110 }
 0x2d4   : > { %v874_v14 = vmul.f32 1.442695, %v847_v34  ;;  %v845_v43 = vsub.f32 %v2733_v54, %v817_v36 }
 0x2d5   : > { %v829_v55 = vpop.xlane.xlu0 %828 }
 0x2d6   : > { %v2869_v62 = vpop.eup %2112  ;;  %2118 = vpow2.f32 %v874_v14  ;;  %v870_v0 = vmul.f32 1.442695, %v845_v43  ;;  %v849_v4 = vsub.f32 %v2742_v61, %v829_v55 }
 0x2d7   : > { %908 = vrot.lane.b32.xlu0 %v2869_v62, %s2344_s22  ;;  %v814_v30 = vpop.xlane.xlu1 %813  ;;  %910 = vrot.lane.b32.xlu1 %v2867_v46, %s2344_s22  ;;  %v2877_v27 = vpop.eup %2114 }
 0x2d8   : > { %2120 = vpow2.f32 %v870_v0  ;;  %v878_v25 = vmul.f32 1.442695, %v849_v4  ;;  %v844_v34 = vsub.f32 %v2739_v58, %v814_v30 }
 0x2d9   : > { %v826_v36 = vpop.xlane.xlu0 %825 }
 0x2da   : > { %2122 = vpow2.f32 %v878_v25  ;;  %v868_v35 = vmul.f32 1.442695, %v844_v34  ;;  %v848_v14 = vsub.f32 %v2751_v5, %v826_v36  ;;  %v2885_v0 = vpop.eup %2116 }
 0x2db   : > { %v820_v43 = vpop.xlane.xlu1 %819  ;;  %914 = vrot.lane.b32.xlu1 %v2877_v27, %s2344_s22 }
 0x2dc   : > { %2124 = vpow2.f32 %v868_v35  ;;  %v876_v55 = vmul.f32 1.442695, %v848_v14  ;;  %v846_v61 = vsub.f32 %v2762_v20, %v820_v43 }
 0x2dd   : > { %v2883_v22 = vpop.xlane.xlu0 %733 }
 0x2de   : > { %2126 = vpow2.f32 %v876_v55  ;;  %v872_v4 = vmul.f32 1.442695, %v846_v61 }
 0x2df   : > { %v835_v30 = vpop.xlane.xlu1 %834  ;;  %912 = vrot.lane.b32.xlu1 %v2885_v0, %s2344_s22 }
 0x2e0   : > { %v2889_v25 = vpop.eup %2118  ;;  %2128 = vpow2.f32 %v872_v4  ;;  %v851_v34 = vsub.f32 %v2768_v23, %v835_v30 }
 0x2e1   : > { %922 = vrot.lane.b32.xlu0 %v2889_v25, %s2344_s22  ;;  %v832_v35 = vpop.xlane.xlu0 %831 }
 0x2e2   : > { %v2894_v36 = vpop.eup %2120  ;;  %v882_v14 = vmul.f32 1.442695, %v851_v34  ;;  %v850_v43 = vsub.f32 %v2777_v28, %v832_v35 }
 0x2e3   : > { %918 = vrot.lane.b32.xlu1 %v2894_v36, %s2344_s22 }
 0x2e4   : > { %v2899_v61 = vpop.eup %2122  ;;  %2130 = vpow2.f32 %v882_v14  ;;  %v880_v55 = vmul.f32 1.442695, %v850_v43  ;;  %v2923_v43 = vpop.xlane.xlu1 %724 }
 0x2e5   : > { %926 = vrot.lane.b32.xlu0 %v2899_v61, %s2344_s22 }
 0x2e6   : > { %v2903_v4 = vpop.eup %2124  ;;  %2132 = vpow2.f32 %v880_v55  ;;  %v2925_v55 = vpop.xlane.xlu0 %748 }
 0x2e7   : > { %916 = vrot.lane.b32.xlu1 %v2903_v4, %s2344_s22 }
 0x2e8   : > { %v2907_v30 = vpop.eup %2126  ;;  %v2927_v29 = vpop.xlane.xlu1 %736 }
 0x2e9   : > { %924 = vrot.lane.b32.xlu0 %v2907_v30, %s2344_s22 }
 0x2ea   : > { %v2911_v34 = vpop.eup %2128  ;;  %v2929_v5 = vpop.xlane.xlu0 %757 }
 0x2eb   : > { %920 = vrot.lane.b32.xlu1 %v2911_v34, %s2344_s22 }
 0x2ec   : > { %v2931_v49 = vpop.xlane.xlu1 %739 }
 0x2ee   : > { %v2915_v35 = vpop.eup %2130  ;;  %v2933_v24 = vpop.xlane.xlu0 %754 }
 0x2ef   : > { %930 = vrot.lane.b32.xlu1 %v2915_v35, %s2344_s22 }
 0x2f0   : > { %v2919_v14 = vpop.eup %2132  ;;  %v2937_v16 = vpop.xlane.xlu1 %742 }
 0x2f1   : > { %928 = vrot.lane.b32.xlu0 %v2919_v14, %s2344_s22 }
 0x2f2   : > { %v2935_v18 = vpop.xlane.xlu0 %763 }
 0x2f4   : > { %v2941_v58 = vpop.xlane.xlu1 %751 }
 0x2f6   : > { %v2939_v20 = vpop.xlane.xlu0 %760 }
 0x33d   : > { %v903_v54 = vpop.permute.xlu0 %902 }
 0x33e   : > { %v952_v60 = vsel %vm948_vm2, %v903_v54, 0.0  ;;  %v901_v19 = vpop.permute.xlu1 %900 }
 0x33f   : > { %953 = vadd.xlane.f32.xlu0 %v952_v60  ;;  %v949_v52 = vsel %vm948_vm2, %v901_v19, 0.0 }
 0x341   : > { %v907_v39 = vpop.permute.xlu0 %906 }
 0x342   : > { %v958_v44 = vsel %vm948_vm2, %v907_v39, 0.0 }
 0x343   : > { %950 = vadd.xlane.f32.xlu0 %v949_v52 }
 0x345   : > { %v905_v37 = vpop.permute.xlu1 %904 }
 0x346   : > { %v955_v50 = vsel %vm948_vm2, %v905_v37, 0.0 }
 0x347   : > { %959 = vadd.xlane.f32.xlu0 %v958_v44  ;;  %956 = vadd.xlane.f32.xlu1 %v955_v50 }
 0x349   : > { %v909_v32 = vpop.permute.xlu0 %908  ;;  %v911_v2 = vpop.permute.xlu1 %910 }
 0x34a   : > { %v961_v42 = vsel %vm948_vm2, %v909_v32, 0.0  ;;  %v964_v26 = vsel %vm948_vm2, %v911_v2, 0.0 }
 0x34b   : > { %962 = vadd.xlane.f32.xlu0 %v961_v42  ;;  %965 = vadd.xlane.f32.xlu1 %v964_v26 }
 0x34d   : > { %v915_v54 = vpop.permute.xlu1 %914 }
 0x34e   : > { %v970_v60 = vsel %vm948_vm2, %v915_v54, 0.0 }
 0x34f   : > { %971 = vadd.xlane.f32.xlu1 %v970_v60 }
 0x351   : > { %v913_v52 = vpop.permute.xlu1 %912 }
 0x352   : > { %v967_v19 = vsel %vm948_vm2, %v913_v52, 0.0 }
 0x353   : > { %v923_v39 = vpop.permute.xlu0 %922  ;;  %968 = vadd.xlane.f32.xlu1 %v967_v19 }
 0x354   : > { %v982_v32 = vsel %vm948_vm2, %v923_v39, 0.0 }
 0x355   : > { %v919_v37 = vpop.permute.xlu1 %918 }
 0x356   : > { %v976_v44 = vsel %vm948_vm2, %v919_v37, 0.0 }
 0x357   : > { %977 = vadd.xlane.f32.xlu0 %v976_v44  ;;  %v927_v50 = vpop.permute.xlu0 %926 }
 0x358   : > { %v988_v2 = vsel %vm948_vm2, %v927_v50, 0.0 }
 0x359   : > { %v917_v15 = vpop.permute.xlu1 %916 }
 0x35a   : > { %v973_v42 = vsel %vm948_vm2, %v917_v15, 0.0 }
 0x35b   : > { %983 = vadd.xlane.f32.xlu0 %v982_v32  ;;  %974 = vadd.xlane.f32.xlu1 %v973_v42  ;;  %v925_v60 = vpop.permute.xlu0 %924 }
 0x35c   : > { %v985_v19 = vsel %vm948_vm2, %v925_v60, 0.0 }
 0x35d   : > { %v921_v26 = vpop.permute.xlu1 %920 }
 0x35e   : > { %v979_v54 = vsel %vm948_vm2, %v921_v26, 0.0 }
 0x35f   : > { %989 = vadd.xlane.f32.xlu0 %v988_v2  ;;  %980 = vadd.xlane.f32.xlu1 %v979_v54 }
 0x361   : > { %v931_v52 = vpop.permute.xlu1 %930 }
 0x362   : > { %v994_v37 = vsel %vm948_vm2, %v931_v52, 0.0 }
 0x363   : > { %v929_v44 = vpop.permute.xlu0 %928  ;;  %986 = vadd.xlane.f32.xlu0 %v985_v19  ;;  %995 = vadd.xlane.f32.xlu1 %v994_v37 }
 0x364   : > { %v991_v15 = vsel %vm948_vm2, %v929_v44, 0.0 }
 0x367   : > { %992 = vadd.xlane.f32.xlu0 %v991_v15 }
 0x3cc   : > { %v954_v39 = vpop.xlane.xlu0 %953 }
 0x3cd   : > { %2134 = vrcp.f32 %v954_v39 }
 0x3d0   : > { %v951_v32 = vpop.xlane.xlu0 %950 }
 0x3d1   : > { %2136 = vrcp.f32 %v951_v32 }
 0x3d4   : > { %v960_v50 = vpop.xlane.xlu0 %959  ;;  %v957_v42 = vpop.xlane.xlu1 %956 }
 0x3d5   : > { %2138 = vrcp.f32 %v960_v50 }
 0x3d6   : > { %2140 = vrcp.f32 %v957_v42 }
 0x3d7   : > { %v2135_v26 = vpop.eup %2134 }
 0x3d8   : > { %v1000_v2 = vmul.f32 %v2135_v26, %v2844_v48  ;;  %v963_v54 = vpop.xlane.xlu0 %962  ;;  %v966_v60 = vpop.xlane.xlu1 %965 }
 0x3d9   : > { %2142 = vrcp.f32 %v963_v54 }
 0x3da   : > { %2144 = vtanh.f32 %v1000_v2 }
 0x3db   : > { %v2137_v52 = vpop.eup %2136  ;;  %2146 = vrcp.f32 %v966_v60 }
 0x3dc   : > { %v998_v19 = vmul.f32 %v2137_v52, %v2846_v56  ;;  %v972_v37 = vpop.xlane.xlu1 %971 }
 0x3dd   : > { %2148 = vrcp.f32 %v972_v37 }
 0x3de   : > { %2150 = vtanh.f32 %v998_v19 }
 0x3df   : > { %v2139_v44 = vpop.eup %2138 }
 0x3e0   : > { %v2141_v15 = vpop.eup %2140  ;;  %v1004_v39 = vmul.f32 %v2139_v44, %v2855_v17  ;;  %v969_v32 = vpop.xlane.xlu1 %968 }
 0x3e1   : > { %v1002_v50 = vmul.f32 %v2141_v15, %v2861_v31  ;;  %2152 = vrcp.f32 %v969_v32 }
 0x3e2   : > { %2154 = vtanh.f32 %v1004_v39 }
 0x3e3   : > { %v2143_v48 = vpop.eup %2142  ;;  %2156 = vtanh.f32 %v1002_v50 }
 0x3e4   : > { %v2145_v42 = vpop.eup %2144  ;;  %v978_v26 = vpop.xlane.xlu0 %977  ;;  %v1006_v54 = vmul.f32 %v2143_v48, %v2869_v62 }
 0x3e5   : > { %v2147_v2 = vpop.eup %2146  ;;  %2158 = vrcp.f32 %v978_v26  ;;  %v1055_v56 = vmul.f32 %v2145_v42, %v2835_v41 }
 0x3e6   : > { %v1008_v60 = vmul.f32 %v2147_v2, %v2867_v46 }
 0x3e7   : > { %v2149_v52 = vpop.eup %2148  ;;  %1088 = vrot.lane.b32.xlu1 %v1055_v56, %s2344_s22 }
 0x3e8   : > { %v2151_v17 = vpop.eup %2150  ;;  %2160 = vtanh.f32 %v1008_v60  ;;  %v984_v31 = vpop.xlane.xlu0 %983  ;;  %v1012_v44 = vmul.f32 %v2149_v52, %v2877_v27 }
 0x3e9   : > { %v975_v19 = vpop.xlane.xlu1 %974  ;;  %2162 = vrcp.f32 %v984_v31  ;;  %v1054_v37 = vmul.f32 %v2151_v17, %v2835_v41 }
 0x3ea   : > { %2164 = vtanh.f32 %v1006_v54 }
 0x3eb   : > { %v2153_v15 = vpop.eup %2152  ;;  %2166 = vrcp.f32 %v975_v19  ;;  %1086 = vrot.lane.b32.xlu1 %v1054_v37, %s2344_s22 }
 0x3ec   : > { %v2155_v62 = vpop.eup %2154  ;;  %v1010_v46 = vmul.f32 %v2153_v15, %v2885_v0  ;;  %2168 = vtanh.f32 %v1012_v44 }
 0x3ed   : > { %v981_v39 = vpop.xlane.xlu1 %980  ;;  %v1057_v32 = vmul.f32 %v2155_v62, %v2835_v41  ;;  %v2157_v50 = vpop.eup %2156 }
 0x3ee   : > { %2170 = vrcp.f32 %v981_v39  ;;  %v1056_v27 = vmul.f32 %v2157_v50, %v2835_v41 }
 0x3ef   : > { %v2159_v48 = vpop.eup %2158  ;;  %1092 = vrot.lane.b32.xlu0 %v1057_v32, %s2344_s22  ;;  %2172 = vtanh.f32 %v1010_v46 }
 0x3f0   : > { %v1016_v42 = vmul.f32 %v2159_v48, %v2894_v36 }
 0x3f1   : > { %v996_v48 = vpop.xlane.xlu1 %995 }
 0x3f2   : > { %v2161_v26 = vpop.eup %2160  ;;  %2174 = vtanh.f32 %v1016_v42 }
 0x3f3   : > { %v2163_v2 = vpop.eup %2162  ;;  %1090 = vrot.lane.b32.xlu0 %v1056_v27, %s2344_s22  ;;  %v1059_v0 = vmul.f32 %v2161_v26, %v2835_v41  ;;  %v990_v27 = vpop.xlane.xlu0 %989 }
 0x3f4   : > { %v2165_v56 = vpop.eup %2164  ;;  %v1020_v54 = vmul.f32 %v2163_v2, %v2889_v25 }
 0x3f5   : > { %v2167_v60 = vpop.eup %2166  ;;  %1096 = vrot.lane.b32.xlu1 %v1059_v0, %s2344_s22  ;;  %v1058_v36 = vmul.f32 %v2165_v56, %v2835_v41 }
 0x3f6   : > { %2176 = vtanh.f32 %v1020_v54  ;;  %v1014_v52 = vmul.f32 %v2167_v60, %v2903_v4  ;;  %v2169_v17 = vpop.eup %2168 }
 0x3f7   : > { %v1061_v44 = vmul.f32 %v2169_v17, %v2835_v41  ;;  %v987_v0 = vpop.xlane.xlu0 %986 }
 0x3f8   : > { %2178 = vtanh.f32 %v1014_v52  ;;  %v2171_v31 = vpop.eup %2170 }
 0x3f9   : > { %1094 = vrot.lane.b32.xlu1 %v1058_v36, %s2344_s22  ;;  %v1018_v19 = vmul.f32 %v2171_v31, %v2911_v34  ;;  %v2173_v37 = vpop.eup %2172 }
 0x3fa   : > { %v1060_v4 = vmul.f32 %v2173_v37, %v2835_v41 }
 0x3fb   : > { %2180 = vtanh.f32 %v1018_v19 }
 0x3fc   : > { %v2175_v15 = vpop.eup %2174  ;;  %2182 = vtanh.f32 %v2777_v28 }
 0x3fd   : > { %1100 = vrot.lane.b32.xlu1 %v1061_v44, %s2344_s22  ;;  %v1063_v25 = vmul.f32 %v2175_v15, %v2835_v41  ;;  %2184 = vtanh.f32 %v2768_v23 }
 0x3fe   : > { %2186 = vtanh.f32 %v2703_v33 }
 0x3ff   : > { %1104 = vrot.lane.b32.xlu0 %v1063_v25, %s2344_s22  ;;  %2188 = vrcp.f32 %v996_v48 }
 0x400   : > { %v2177_v62 = vpop.eup %2176  ;;  %2190 = vrcp.f32 %v990_v27 }
 0x401   : > { %1098 = vrot.lane.b32.xlu1 %v1060_v4, %s2344_s22  ;;  %v1065_v39 = vmul.f32 %v2177_v62, %v2835_v41  ;;  %2192 = vrcp.f32 %v987_v0  ;;  %v772_v62 = vadd.f32 %v2717_v40, %v2859_v21  ;;  %v780_v21 = vadd.f32 %v2717_v40, %v2941_v58 }
 0x402   : > { %v2179_v46 = vpop.eup %2178  ;;  %v781_v58 = vadd.f32 %v2717_v40, %v2933_v24  ;;  %v783_v24 = vadd.f32 %v2717_v40, %v2939_v20 }
 0x403   : > { %v1062_v34 = vmul.f32 %v2179_v46, %v2835_v41 }
 0x405   : > { %1108 = vrot.lane.b32.xlu1 %v1065_v39, %s2344_s22  ;;  %1102 = vrot.lane.b32.xlu0 %v1062_v34, %s2344_s22  ;;  %v2181_v32 = vpop.eup %2180 }
 0x406   : > { %v1064_v50 = vmul.f32 %v2181_v32, %v2835_v41  ;;  %v2998_v42 = vpop.eup %2182  ;;  %v774_v32 = vadd.f32 %v2717_v40, %v2883_v22  ;;  %v779_v22 = vadd.f32 %v2717_v40, %v2925_v55  ;;  %v777_v55 = vadd.f32 %v2717_v40, %v2937_v16 }
 0x407   : > { %v721_v26 = vmul.f32 %v2998_v42, %v2717_v40  ;;  %v3002_v2 = vpop.eup %2184 }
 0x408   : > { %v722_v54 = vmul.f32 %v3002_v2, %v2717_v40  ;;  %v3007_v60 = vpop.eup %2186 }
 0x409   : > { %1106 = vrot.lane.b32.xlu1 %v1064_v50, %s2344_s22  ;;  %v765_v56 = vsel %vm274_vm0, %v721_v26, 0.0  ;;  %v2189_v36 = vpop.eup %2188  ;;  %v714_v17 = vmul.f32 %v3007_v60, %v2717_v40  ;;  %v775_v50 = vadd.f32 %v2717_v40, %v2927_v29  ;;  %v776_v29 = vadd.f32 %v2717_v40, %v2931_v49  ;;  %v993_v26 = vpop.xlane.xlu0 %992 }
 0x40a   : > { %v768_v52 = vsel %vm274_vm0, %v722_v54, 0.0  ;;  %v1028_v31 = vmul.f32 %v2189_v36, %v2915_v35  ;;  %v2191_v19 = vpop.eup %2190 }
 0x40b   : > { %v744_v37 = vsel %vm274_vm0, %v714_v17, 0.0  ;;  %v1024_v44 = vmul.f32 %v2191_v19, %v2899_v61  ;;  %v2193_v15 = vpop.eup %2192  ;;  %v773_v61 = vadd.f32 %v2717_v40, %v2853_v7  ;;  %v771_v7 = vadd.f32 %v2717_v40, %v2923_v43 }
 0x40c   : > { %2194 = vtanh.f32 %v1028_v31  ;;  %v1022_v25 = vmul.f32 %v2193_v15, %v2907_v30  ;;  %v782_v43 = vadd.f32 %v2717_v40, %v2929_v5  ;;  %v784_v5 = vadd.f32 %v2717_v40, %v2935_v18 }
 0x40d   : > { %2196 = vtanh.f32 %v1024_v44 }
 0x40e   : > { %2198 = vtanh.f32 %v1022_v25 }
 0x40f   : > { %2200 = vrcp.f32 %v993_v26 }
 0x416   : > { %v2195_v4 = vpop.eup %2194 }
 0x417   : > { %v1069_v39 = vmul.f32 %v2195_v4, %v2835_v41  ;;  %v2197_v46 = vpop.eup %2196 }
 0x418   : > { %v1067_v35 = vmul.f32 %v2197_v46, %v2835_v41  ;;  %v2199_v34 = vpop.eup %2198 }
 0x419   : > { %v1066_v30 = vmul.f32 %v2199_v34, %v2835_v41  ;;  %v2201_v17 = vpop.eup %2200 }
 0x41a   : > { %v1026_v31 = vmul.f32 %v2201_v17, %v2919_v14 }
 0x41c   : > { %2202 = vtanh.f32 %v1026_v31 }
 0x424   : > { %766 = vadd.xlane.f32.xlu0 %v765_v56 }
 0x426   : > { %v2203_v4 = vpop.eup %2202 }
 0x428   : > { %769 = vadd.xlane.f32.xlu0 %v768_v52 }
 0x42d   : > { %745 = vadd.xlane.f32.xlu1 %v744_v37 }
 0x43e   : > { %1216 = vrot.lane.b32.xlu0 %v772_v62, %s2345_s25  ;;  %1116 = vrot.lane.b32.xlu1 %v1069_v39, %s2344_s22  ;;  %v1068_v62 = vmul.f32 %v2203_v4, %v2835_v41 }
 0x442   : > { %1112 = vrot.lane.b32.xlu0 %v1067_v35, %s2344_s22  ;;  %1218 = vrot.lane.b32.xlu1 %v773_v61, %s2345_s25 }
 0x446   : > { %1110 = vrot.lane.b32.xlu0 %v1066_v30, %s2344_s22  ;;  %1232 = vrot.lane.b32.xlu1 %v780_v21, %s2345_s25 }
 0x44a   : > { %1214 = vrot.lane.b32.xlu0 %v771_v7, %s2345_s25  ;;  %1220 = vrot.lane.b32.xlu1 %v774_v32, %s2345_s25  ;;  %v1489_v32 = vrot.slane %v2604_v51, 7  ;;  %v2347_v7 = vmov 2  }
 0x44b   : > { %2043 = vset.pattern.permute.xlu0 %v2347_v7  ;;  %2042 = vset.pattern.permute.xlu1 %v2347_v7 }
 0x44e   : > { %1234 = vrot.lane.b32.xlu0 %v781_v58, %s2345_s25  ;;  %1222 = vrot.lane.b32.xlu1 %v775_v50, %s2345_s25  ;;  %v1487_v58 = vrot.slane %v2594_v45, 7 }
 0x452   : > { %1230 = vrot.lane.b32.xlu0 %v779_v22, %s2345_s25  ;;  %1236 = vrot.lane.b32.xlu1 %v782_v43, %s2345_s25 }
 0x456   : > { %1224 = vrot.lane.b32.xlu0 %v776_v29, %s2345_s25  ;;  %1238 = vrot.lane.b32.xlu1 %v783_v24, %s2345_s25 }
 0x459   : > { %v1089_v48 = vpop.permute.xlu1 %1088 }
 0x45a   : > { %1226 = vrot.lane.b32.xlu0 %v777_v55, %s2345_s25  ;;  %1240 = vrot.lane.b32.xlu1 %v784_v5, %s2345_s25  ;;  %v1137_v35 = vsel %vm948_vm2, %v1089_v48, 0.0 }
 0x45d   : > { %v1087_v27 = vpop.permute.xlu1 %1086 }
 0x45e   : > { %v1134_v14 = vsel %vm948_vm2, %v1087_v27, 0.0 }
 0x461   : > { %v1093_v0 = vpop.permute.xlu0 %1092 }
 0x462   : > { %v1143_v34 = vsel %vm948_vm2, %v1093_v0, 0.0 }
 0x465   : > { %v1091_v56 = vpop.permute.xlu0 %1090 }
 0x466   : > { %v1140_v41 = vsel %vm948_vm2, %v1091_v56, 0.0 }
 0x467   : > { %v1097_v49 = vpop.permute.xlu1 %1096 }
 0x468   : > { %v1149_v21 = vsel %vm948_vm2, %v1097_v49, 0.0 }
 0x46b   : > { %v1095_v20 = vpop.permute.xlu1 %1094 }
 0x46c   : > { %v1146_v30 = vsel %vm948_vm2, %v1095_v20, 0.0 }
 0x46f   : > { %v1101_v54 = vpop.permute.xlu1 %1100 }
 0x470   : > { %v1155_v39 = vsel %vm948_vm2, %v1101_v54, 0.0 }
 0x471   : > { %v1105_v52 = vpop.permute.xlu0 %1104 }
 0x472   : > { %v1161_v43 = vsel %vm948_vm2, %v1105_v52, 0.0 }
 0x473   : > { %v1099_v36 = vpop.permute.xlu1 %1098 }
 0x474   : > { %v1152_v50 = vsel %vm948_vm2, %v1099_v36, 0.0 }
 0x477   : > { %v1103_v16 = vpop.permute.xlu0 %1102  ;;  %v1109_v18 = vpop.permute.xlu1 %1108 }
 0x478   : > { %v1158_v51 = vsel %vm948_vm2, %v1103_v16, 0.0  ;;  %v1167_v24 = vsel %vm948_vm2, %v1109_v18, 0.0 }
 0x47b   : > { %v1107_v44 = vpop.permute.xlu1 %1106 }
 0x47c   : > { %v1164_v5 = vsel %vm948_vm2, %v1107_v44, 0.0 }
 0x4b1   : > { %v767_v19 = vpop.xlane.xlu0 %766 }
 0x4b2   : > { %v785_v37 = vadd.f32 %v2717_v40, %v767_v19  ;;  %v1488_v19 = vrot.slane %v2597_v47, 7  ;;  %v2212_v47 = vld [vmem:[%s3250_s3 + $0x3] ss:$0 sm:$0xff] }
 0x4b4   : > { %1242 = vrot.lane.b32.xlu1 %v785_v37, %s2345_s25  ;;  %v1496_v37 = vrot.slane %v2633_v3, 7 }
 0x4b5   : > { %v770_v22 = vpop.xlane.xlu0 %769 }
 0x4b6   : > { %v786_v31 = vadd.f32 %v2717_v40, %v770_v22 }
 0x4b9   : > { %v1217_v29 = vpop.permute.xlu0 %1216 }
 0x4ba   : > { %v746_v15 = vpop.xlane.xlu1 %745 }
 0x4bb   : > { %v778_v25 = vadd.f32 %v2717_v40, %v746_v15  ;;  %v1490_v15 = vrot.slane %v2607_v53, 7 }
 0x4bd   : > { %1228 = vrot.lane.b32.xlu0 %v778_v25, %s2345_s25  ;;  %v1113_v55 = vpop.permute.xlu0 %1112 }
 0x4be   : > { %v1117_v46 = vpop.permute.xlu1 %1116  ;;  %v1173_v45 = vsel %vm948_vm2, %v1113_v55, 0.0 }
 0x4bf   : > { %v1179_v61 = vsel %vm948_vm2, %v1117_v46, 0.0 }
 0x4c1   : > { %1114 = vrot.lane.b32.xlu0 %v1068_v62, %s2344_s22  ;;  %v1111_v48 = vpop.permute.xlu0 %1110 }
 0x4c2   : > { %v1170_v27 = vsel %vm948_vm2, %v1111_v48, 0.0  ;;  %v1219_v17 = vpop.permute.xlu1 %1218 }
 0x4c5   : > { %v1215_v49 = vpop.permute.xlu0 %1214 }
 0x4c6   : > { %v1233_v16 = vpop.permute.xlu1 %1232 }
 0x4c9   : > { %v3087_v26 = vpop.permute.xlu0 %1234 }
 0x4ca   : > { %v1221_v18 = vpop.permute.xlu1 %1220 }
 0x4cd   : > { %v1231_v0 = vpop.permute.xlu0 %1230 }
 0x4ce   : > { %v1223_v44 = vpop.permute.xlu1 %1222 }
 0x4d1   : > { %v1225_v20 = vpop.permute.xlu0 %1224 }
 0x4d2   : > { %v1237_v25 = vpop.permute.xlu1 %1236 }
 0x4d5   : > { %v1227_v56 = vpop.permute.xlu0 %1226 }
 0x4d6   : > { %v1239_v4 = vpop.permute.xlu1 %1238 }
 0x4d8   : > { %1135 = vadd.xlane.f32.xlu1 %v1134_v14 }
 0x4da   : > { %v1241_v62 = vpop.permute.xlu1 %1240 }
 0x4dc   : > { %1156 = vadd.xlane.f32.xlu1 %v1155_v39 }
 0x4e0   : > { %1138 = vadd.xlane.f32.xlu0 %v1137_v35  ;;  %1180 = vadd.xlane.f32.xlu1 %v1179_v61 }
 0x4e4   : > { %1144 = vadd.xlane.f32.xlu0 %v1143_v34 }
 0x4e8   : > { %1141 = vadd.xlane.f32.xlu0 %v1140_v41 }
 0x4ec   : > { %1150 = vadd.xlane.f32.xlu0 %v1149_v21 }
 0x4f0   : > { %1147 = vadd.xlane.f32.xlu0 %v1146_v30 }
 0x4f1   : > { %1507 = vrot.lane.b32.xlu1 %v1489_v32, %s2346_s8 }
 0x4f4   : > { %1153 = vadd.xlane.f32.xlu0 %v1152_v50 }
 0x4f5   : > { %1503 = vrot.lane.b32.xlu1 %v1487_v58, %s2346_s8 }
 0x4f8   : > { %1162 = vadd.xlane.f32.xlu0 %v1161_v43 }
 0x4fc   : > { %1159 = vadd.xlane.f32.xlu0 %v1158_v51 }
 0x500   : > { %1168 = vadd.xlane.f32.xlu0 %v1167_v24 }
 0x504   : > { %1165 = vadd.xlane.f32.xlu0 %v1164_v5 }
 0x508   : > { %1174 = vadd.xlane.f32.xlu0 %v1173_v45 }
 0x50c   : > { %1171 = vadd.xlane.f32.xlu0 %v1170_v27 }
 0x526   : > { %v1243_v40 = vpop.permute.xlu1 %1242 }
 0x52f   : > { %v1229_v54 = vpop.permute.xlu0 %1228 }
 0x533   : > { %v1115_v52 = vpop.permute.xlu0 %1114 }
 0x534   : > { %v1176_v36 = vsel %vm948_vm2, %v1115_v52, 0.0 }
 0x535   : > { %1177 = vadd.xlane.f32.xlu0 %v1176_v36 }
 0x54b   : > { %1244 = vrot.lane.b32.xlu0 %v786_v31, %s2345_s25 }
 0x54f   : > { %1505 = vrot.lane.b32.xlu0 %v1488_v19, %s2346_s8 }
 0x553   : > { %1521 = vrot.lane.b32.xlu0 %v1496_v37, %s2346_s8 }
 0x557   : > { %1509 = vrot.lane.b32.xlu0 %v1490_v15, %s2346_s8 }
 0x565   : > { %v1136_v14 = vpop.xlane.xlu1 %1135 }
 0x566   : > { %v1182_v61 = vadd.f32 %v2212_v47, %v1136_v14 }
 0x568   : > { %v1262_v41 = vmul.f32 %v1215_v49, %v1182_v61 }
 0x569   : > { %v1157_v7 = vpop.xlane.xlu1 %1156 }
 0x56a   : > { %v1189_v22 = vadd.f32 %v2212_v47, %v1157_v7 }
 0x56d   : > { %v1139_v39 = vpop.xlane.xlu0 %1138  ;;  %v1181_v61 = vpop.xlane.xlu1 %1180 }
 0x56e   : > { %v1183_v46 = vadd.f32 %v2212_v47, %v1139_v39 }
 0x570   : > { %v1263_v3 = vmul.f32 %v1217_v29, %v1183_v46  ;;  %v1269_v29 = vmul.f32 %v1229_v54, %v1189_v22 }
 0x571   : > { %v1145_v35 = vpop.xlane.xlu0 %1144 }
 0x572   : > { %v1185_v34 = vadd.f32 %v2212_v47, %v1145_v35  ;;  %1285 = vperm.xlu1 %2042, %v1263_v3   ;;  %v1197_v35 = vadd.f32 %v2212_v47, %v1181_v61 }
 0x574   : > { %v1265_v53 = vmul.f32 %v1221_v18, %v1185_v34 }
 0x575   : > { %v1142_v21 = vpop.xlane.xlu0 %1141 }
 0x576   : > { %v1184_v30 = vadd.f32 %v2212_v47, %v1142_v21  ;;  %1295 = vperm.xlu0 %2043, %v1265_v53   ;;  %1280 = vperm.xlu1 %2042, %v1262_v41   ;;  %v1495_v53 = vrot.slane %v2636_v6, 7  ;;  %v1501_v6 = vrot.slane %v2661_v13, 7 }
 0x578   : > { %v1264_v32 = vmul.f32 %v1219_v17, %v1184_v30 }
 0x579   : > { %v1151_v50 = vpop.xlane.xlu0 %1150 }
 0x57a   : > { %v1187_v58 = vadd.f32 %v2212_v47, %v1151_v50  ;;  %1290 = vperm.xlu0 %2043, %v1264_v32  }
 0x57c   : > { %v1267_v43 = vmul.f32 %v1225_v20, %v1187_v58 }
 0x57d   : > { %v1148_v51 = vpop.xlane.xlu0 %1147 }
 0x57e   : > { %v1186_v24 = vadd.f32 %v2212_v47, %v1148_v51  ;;  %1305 = vperm.xlu1 %2042, %v1267_v43  }
 0x580   : > { %v1266_v55 = vmul.f32 %v1223_v44, %v1186_v24 }
 0x581   : > { %v1154_v5 = vpop.xlane.xlu0 %1153 }
 0x582   : > { %v1188_v45 = vadd.f32 %v2212_v47, %v1154_v5  ;;  %1300 = vperm.xlu0 %2043, %v1266_v55   ;;  %1315 = vperm.xlu1 %2042, %v1269_v29   ;;  %v3314_v55 = vld [vmem:[#allocation22_spill] sm:$0xff] }
 0x584   : > { %v1268_v48 = vmul.f32 %v1227_v56, %v1188_v45 }
 0x585   : > { %v1163_v27 = vpop.xlane.xlu0 %1162 }
 0x586   : > { %v1191_v49 = vadd.f32 %v2212_v47, %v1163_v27  ;;  %1310 = vperm.xlu1 %2042, %v1268_v48   ;;  %v3315_v48 = vld [vmem:[#allocation24_spill] sm:$0xff] }
 0x588   : > { %v1271_v52 = vmul.f32 %v1233_v16, %v1191_v49  ;;  %v3316_v49 = vld [vmem:[#allocation16_spill] sm:$0xff] }
 0x589   : > { %v1160_v36 = vpop.xlane.xlu0 %1159 }
 0x58a   : > { %v1190_v17 = vadd.f32 %v2212_v47, %v1160_v36  ;;  %1325 = vperm.xlu1 %2042, %v1271_v52  }
 0x58c   : > { %v1270_v31 = vmul.f32 %v1231_v0, %v1190_v17 }
 0x58d   : > { %v1169_v18 = vpop.xlane.xlu0 %1168 }
 0x58e   : > { %v1193_v20 = vadd.f32 %v2212_v47, %v1169_v18  ;;  %1320 = vperm.xlu1 %2042, %v1270_v31  }
 0x590   : > { %v1273_v19 = vmul.f32 %v1237_v25, %v1193_v20 }
 0x591   : > { %v1166_v37 = vpop.xlane.xlu0 %1165 }
 0x592   : > { %v1192_v54 = vadd.f32 %v2212_v47, %v1166_v37  ;;  %1335 = vperm.xlu0 %2043, %v1273_v19  }
 0x594   : > { %v1272_v44 = vmul.f32 %v3087_v26, %v1192_v54  ;;  %v1491_v26 = vrot.slane %v2614_v57, 7  ;;  %v1492_v57 = vrot.slane %v2617_v59, 7  ;;  %v1502_v59 = vrot.slane %v2659_v12, 7 }
 0x595   : > { %v1175_v15 = vpop.xlane.xlu0 %1174 }
 0x596   : > { %v1195_v14 = vadd.f32 %v2212_v47, %v1175_v15  ;;  %1330 = vperm.xlu1 %2042, %v1272_v44  }
 0x598   : > { %v1275_v56 = vmul.f32 %v1241_v62, %v1195_v14  ;;  %v1497_v62 = vrot.slane %v2645_v9, 7  ;;  %v1500_v9 = vrot.slane %v2651_v10, 7 }
 0x599   : > { %v1172_v39 = vpop.xlane.xlu0 %1171 }
 0x59a   : > { %v1194_v46 = vadd.f32 %v2212_v47, %v1172_v39  ;;  %1345 = vperm.xlu0 %2043, %v1275_v56  }
 0x59c   : > { %v1274_v16 = vmul.f32 %v1239_v4, %v1194_v46  ;;  %v1498_v4 = vrot.slane %v2643_v8, 7  ;;  %v1493_v8 = vrot.slane %v2624_v63, 7  ;;  %v3318_v46 = vld [vmem:[#allocation25_spill] sm:$0xff] }
 0x59e   : > { %1340 = vperm.xlu0 %2043, %v1274_v16  }
 0x5c2   : > { %v1178_v0 = vpop.xlane.xlu0 %1177 }
 0x5c3   : > { %v1196_v3 = vadd.f32 %v2212_v47, %v1178_v0  ;;  %v3124_v47 = vpop.permute.xlu1 %1507 }
 0x5c5   : > { %v1276_v34 = vmul.f32 %v1243_v40, %v1196_v3  ;;  %v1499_v40 = vrot.slane %v2653_v11, 7  ;;  %v1494_v11 = vrot.slane %v2627_v1, 7  ;;  %v3319_v3 = vld [vmem:[#allocation29_spill] sm:$0xff] }
 0x5c6   : > { %v1245_v25 = vpop.permute.xlu0 %1244 }
 0x5c7   : > { %v1277_v41 = vmul.f32 %v1245_v25, %v1197_v35  ;;  %1350 = vperm.xlu0 %2043, %v1276_v34   ;;  %v3126_v10 = vpop.permute.xlu1 %1503  ;;  %v3320_v34 = vld [vmem:[#allocation28_spill] sm:$0xff] }
 0x5c9   : > { %1355 = vperm.xlu1 %2042, %v1277_v41   ;;  %v3321_v41 = vld [vmem:[#allocation26_spill] sm:$0xff] }
 0x5ca   : > { %v3128_v63 = vpop.permute.xlu0 %1505 }
 0x5cb   : > { %1511 = vrot.lane.b32.xlu0 %v1491_v26, %s2346_s8 }
 0x5cd   : > { %1523 = vrot.lane.b32.xlu1 %v1497_v62, %s2346_s8 }
 0x5ce   : > { %v3130_v32 = vpop.permute.xlu0 %1521 }
 0x5cf   : > { %1525 = vrot.lane.b32.xlu0 %v1498_v4, %s2346_s8 }
 0x5d1   : > { %1519 = vrot.lane.b32.xlu1 %v1495_v53, %s2346_s8 }
 0x5d2   : > { %v3132_v7 = vpop.permute.xlu0 %1509 }
 0x5d3   : > { %1527 = vrot.lane.b32.xlu0 %v1499_v40, %s2346_s8 }
 0x5d5   : > { %1513 = vrot.lane.b32.xlu1 %v1492_v57, %s2346_s8 }
 0x5d7   : > { %1529 = vrot.lane.b32.xlu0 %v1500_v9, %s2346_s8  ;;  %v3322_v9 = vld [vmem:[#allocation27_spill] sm:$0xff] }
 0x5d9   : > { %1515 = vrot.lane.b32.xlu1 %v1493_v8, %s2346_s8 }
 0x5db   : > { %1531 = vrot.lane.b32.xlu0 %v1501_v6, %s2346_s8 }
 0x5dd   : > { %1517 = vrot.lane.b32.xlu1 %v1494_v11, %s2346_s8 }
 0x5e1   : > { %1533 = vrot.lane.b32.xlu1 %v1502_v59, %s2346_s8  ;;  %v3323_v59 = vld [vmem:[#allocation30_spill] sm:$0xff] }
 0x5f1   : > { %v1286_v21 = vpop.permute.xlu1 %1285 }
 0x5f2   : > { %v1359_v58 = vmul.f32 %v2712_v38, %v1286_v21  ;;  %v3317_v38 = vld [vmem:[#allocation32_spill] sm:$0xff] }
 0x5f4   : > { %v1382_v43 = vsel %vm1374_vm3, %v1359_v58, 0.0 }
 0x5f5   : > { %v1281_v30 = vpop.permute.xlu1 %1280  ;;  %v1296_v50 = vpop.permute.xlu0 %1295  ;;  %v1383_v24 = vrot.slane %v1382_v43, 4 }
 0x5f6   : > { %v1361_v5 = vmul.f32 %v3314_v55, %v1296_v50  ;;  %v1358_v27 = vmul.f32 %v3315_v48, %v1281_v30 }
 0x5f7   : > { %v1384_v45 = vadd.f32 %v1383_v24, %v1382_v43 }
 0x5f8   : > { %v1396_v17 = vsel %vm1374_vm3, %v1361_v5, 0.0  ;;  %v1375_v37 = vsel %vm1374_vm3, %v1358_v27, 0.0 }
 0x5f9   : > { %v1291_v22 = vpop.permute.xlu0 %1290  ;;  %v1385_v20 = vrot.slane %v1384_v45, 2  ;;  %v1397_v19 = vrot.slane %v1396_v17, 4  ;;  %v1376_v14 = vrot.slane %v1375_v37, 4 }
 0x5fa   : > { %v1360_v52 = vmul.f32 %v3316_v49, %v1291_v22  ;;  %v3324_v22 = vld [vmem:[#allocation33_spill] sm:$0xff] }
 0x5fb   : > { %v1386_v61 = vadd.f32 %v1385_v20, %v1384_v45  ;;  %v1398_v0 = vadd.f32 %v1397_v19, %v1396_v17  ;;  %v1377_v53 = vadd.f32 %v1376_v14, %v1375_v37 }
 0x5fc   : > { %v1389_v54 = vsel %vm1374_vm3, %v1360_v52, 0.0 }
 0x5fd   : > { %v1306_v13 = vpop.permute.xlu1 %1305  ;;  %v1390_v56 = vrot.slane %v1389_v54, 4  ;;  %v1387_v6 = vrot.slane %v1386_v61, 1  ;;  %v1399_v11 = vrot.slane %v1398_v0, 2  ;;  %v1378_v27 = vrot.slane %v1377_v53, 2 }
 0x5fe   : > { %v1363_v25 = vmul.f32 %v3320_v34, %v1306_v13 }
 0x5ff   : > { %v1391_v40 = vadd.f32 %v1390_v56, %v1389_v54  ;;  %v1400_v17 = vadd.f32 %v1399_v11, %v1398_v0 }
 0x600   : > { %v1410_v50 = vsel %vm1374_vm3, %v1363_v25, 0.0 }
 0x601   : > { %v1316_v1 = vpop.permute.xlu1 %1315  ;;  %v1301_v29 = vpop.permute.xlu0 %1300  ;;  %v1392_v5 = vrot.slane %v1391_v40, 2 }
 0x602   : > { %v1362_v26 = vmul.f32 %v3321_v41, %v1301_v29  ;;  %v1365_v58 = vmul.f32 %v3007_v60, %v1316_v1  ;;  %v3325_v29 = vld [vmem:[#allocation31_spill] sm:$0xff] }
 0x603   : > { %v1393_v19 = vadd.f32 %v1392_v5, %v1391_v40 }
 0x604   : > { %v1403_v13 = vsel %vm1374_vm3, %v1362_v26, 0.0 }
 0x605   : > { %v1311_v12 = vpop.permute.xlu1 %1310  ;;  %v1404_v49 = vrot.slane %v1403_v13, 4  ;;  %v1394_v25 = vrot.slane %v1393_v19, 1 }
 0x606   : > { %v1364_v21 = vmul.f32 %v3323_v59, %v1311_v12  ;;  %v1411_v12 = vrot.slane %v1410_v50, 4 }
 0x607   : > { %v1405_v14 = vadd.f32 %v1404_v49, %v1403_v13 }
 0x608   : > { %v1417_v52 = vsel %vm1374_vm3, %v1364_v21, 0.0 }
 0x609   : > { %v1326_v51 = vpop.permute.xlu1 %1325  ;;  %v1418_v37 = vrot.slane %v1417_v52, 4  ;;  %v1406_v40 = vrot.slane %v1405_v14, 2 }
 0x60a   : > { %v1367_v18 = vmul.f32 %v3317_v38, %v1326_v51 }
 0x60b   : > { %v1419_v41 = vadd.f32 %v1418_v37, %v1417_v52 }
 0x60c   : > { %v1438_v39 = vsel %vm1374_vm3, %v1367_v18, 0.0 }
 0x60d   : > { %v1321_v31 = vpop.permute.xlu1 %1320  ;;  %v1439_v62 = vrot.slane %v1438_v39, 4 }
 0x60e   : > { %v1366_v16 = vmul.f32 %v3318_v46, %v1321_v31  ;;  %v1424_v31 = vsel %vm1374_vm3, %v1365_v58, 0.0  ;;  %v1395_v58 = vadd.f32 %v1394_v25, %v1393_v19 }
 0x60f   : > { %v1440_v51 = vadd.f32 %v1439_v62, %v1438_v39  ;;  %v1425_v46 = vrot.slane %v1424_v31, 4 }
 0x610   : > { %v1431_v57 = vsel %vm1374_vm3, %v1366_v16, 0.0  ;;  %v1553_v19 = vmul.f32 %v3124_v47, %v1395_v58 }
 0x611   : > { %v1336_v36 = vpop.permute.xlu0 %1335  ;;  %v1432_v24 = vrot.slane %v1431_v57, 4  ;;  %v1441_v1 = vrot.slane %v1440_v51, 2 }
 0x612   : > { %v1369_v8 = vmul.f32 %v3322_v9, %v1336_v36  ;;  %v1388_v36 = vadd.f32 %v1387_v6, %v1386_v61  ;;  %v1401_v61 = vrot.slane %v1400_v17, 1  ;;  %v1586_v25 = vrot.slane %v1553_v19, 6 }
 0x613   : > { %v1433_v38 = vadd.f32 %v1432_v24, %v1431_v57  ;;  %v1442_v0 = vadd.f32 %v1441_v1, %v1440_v51 }
 0x614   : > { %v1452_v45 = vsel %vm1374_vm3, %v1369_v8, 0.0  ;;  %v3163_v39 = vmul.f32 %v3128_v63, %v1388_v36  ;;  %v1426_v8 = vadd.f32 %v1425_v46, %v1424_v31 }
 0x615   : > { %v1331_v15 = vpop.permute.xlu1 %1330  ;;  %v1453_v18 = vrot.slane %v1452_v45, 4  ;;  %v1443_v59 = vrot.slane %v1442_v0, 1 }
 0x616   : > { %v1368_v35 = vmul.f32 %v3319_v3, %v1331_v15  ;;  %v1412_v15 = vadd.f32 %v1411_v12, %v1410_v50  ;;  %v1434_v3 = vrot.slane %v1433_v38, 2 }
 0x618   : > { %v1445_v30 = vsel %vm1374_vm3, %v1368_v35, 0.0  ;;  %v1454_v35 = vadd.f32 %v1453_v18, %v1452_v45  ;;  %v1435_v13 = vadd.f32 %v1434_v3, %v1433_v38  ;;  %v1402_v45 = vadd.f32 %v1401_v61, %v1400_v17 }
 0x619   : > { %v1346_v44 = vpop.permute.xlu0 %1345  ;;  %v1446_v48 = vrot.slane %v1445_v30, 4 }
 0x61a   : > { %v1371_v55 = vmul.f32 %v3325_v29, %v1346_v44  ;;  %v1379_v44 = vadd.f32 %v1378_v27, %v1377_v53  ;;  %v1413_v53 = vrot.slane %v1412_v15, 2  ;;  %v1455_v21 = vrot.slane %v1454_v35, 2 }
 0x61b   : > { %v1447_v54 = vadd.f32 %v1446_v48, %v1445_v30  ;;  %v1427_v48 = vrot.slane %v1426_v8, 2  ;;  %v1436_v31 = vrot.slane %v1435_v13, 1 }
 0x61c   : > { %v1466_v20 = vsel %vm1374_vm3, %v1371_v55, 0.0  ;;  %v1407_v55 = vadd.f32 %v1406_v40, %v1405_v14  ;;  %v1414_v12 = vadd.f32 %v1413_v53, %v1412_v15  ;;  %v1456_v52 = vadd.f32 %v1455_v21, %v1454_v35 }
 0x61d   : > { %v1341_v4 = vpop.permute.xlu0 %1340  ;;  %v1467_v16 = vrot.slane %v1466_v20, 4  ;;  %v1448_v26 = vrot.slane %v1447_v54, 2  ;;  %v1554_v15 = vmul.f32 %v3132_v7, %v1402_v45  ;;  %v1428_v46 = vadd.f32 %v1427_v48, %v1426_v8 }
 0x61e   : > { %v1370_v43 = vmul.f32 %v3324_v22, %v1341_v4  ;;  %v1380_v4 = vrot.slane %v1379_v44, 1  ;;  %v1420_v22 = vrot.slane %v1419_v41, 2  ;;  %v1408_v37 = vrot.slane %v1407_v55, 1 }
 0x61f   : > { %v1468_v63 = vadd.f32 %v1467_v16, %v1466_v20  ;;  %v1583_v20 = vrot.slane %v3163_v39, 7  ;;  %v1415_v14 = vrot.slane %v1414_v12, 1  ;;  %v1437_v61 = vadd.f32 %v1436_v31, %v1435_v13 }
 0x620   : > { %v1459_v60 = vsel %vm1374_vm3, %v1370_v43, 0.0  ;;  %v1449_v43 = vadd.f32 %v1448_v26, %v1447_v54  ;;  %v1421_v18 = vadd.f32 %v1420_v22, %v1419_v41  ;;  %v1409_v41 = vadd.f32 %v1408_v37, %v1407_v55 }
 0x621   : > { %v1460_v56 = vrot.slane %v1459_v60, 4  ;;  %v1469_v27 = vrot.slane %v1468_v63, 2  ;;  %v1416_v53 = vadd.f32 %v1415_v14, %v1414_v12 }
 0x622   : > { %v1450_v38 = vrot.slane %v1449_v43, 1  ;;  %v1422_v47 = vrot.slane %v1421_v18, 1 }
 0x623   : > { %v1461_v57 = vadd.f32 %v1460_v56, %v1459_v60  ;;  %v1381_v60 = vadd.f32 %v1380_v4, %v1379_v44  ;;  %v1470_v56 = vadd.f32 %v1469_v27, %v1468_v63  ;;  %v1457_v44 = vrot.slane %v1456_v52, 1 }
 0x625   : > { %v1462_v51 = vrot.slane %v1461_v57, 2  ;;  %v1551_v35 = vmul.f32 %v3126_v10, %v1381_v60  ;;  %v1471_v40 = vrot.slane %v1470_v56, 1  ;;  %v1423_v10 = vadd.f32 %v1422_v47, %v1421_v18 }
 0x627   : > { %v1463_v54 = vadd.f32 %v1462_v51, %v1461_v57  ;;  %v1429_v57 = vrot.slane %v1428_v46, 1 }
 0x629   : > { %v1430_v48 = vadd.f32 %v1429_v57, %v1428_v46 }
 0x646   : > { %v1351_v34 = vpop.permute.xlu0 %1350 }
 0x647   : > { %v1372_v62 = vmul.f32 %v2998_v42, %v1351_v34  ;;  %v1451_v34 = vadd.f32 %v1450_v38, %v1449_v43 }
 0x648   : > { %v1356_v9 = vpop.permute.xlu1 %1355 }
 0x649   : > { %v1473_v6 = vsel %vm1374_vm3, %v1372_v62, 0.0  ;;  %v1373_v11 = vmul.f32 %v3002_v2, %v1356_v9  ;;  %v1444_v2 = vadd.f32 %v1443_v59, %v1442_v0  ;;  %v1464_v62 = vrot.slane %v1463_v54, 1 }
 0x64a   : > { %v1474_v30 = vrot.slane %v1473_v6, 4  ;;  %v1512_v50 = vpop.permute.xlu0 %1511 }
 0x64b   : > { %v1480_v42 = vsel %vm1374_vm3, %v1373_v11, 0.0  ;;  %v1560_v16 = vmul.f32 %v3130_v32, %v1444_v2  ;;  %v1555_v9 = vmul.f32 %v1512_v50, %v1409_v41  ;;  %v1458_v32 = vadd.f32 %v1457_v44, %v1456_v52 }
 0x64c   : > { %v1475_v24 = vadd.f32 %v1474_v30, %v1473_v6  ;;  %v1481_v29 = vrot.slane %v1480_v42, 4  ;;  %v1524_v5 = vpop.permute.xlu1 %1523  ;;  %v1589_v11 = vrot.slane %v1554_v15, 5  ;;  %v1585_v30 = vsel %vm1584_vm4, %v1583_v20, %v1551_v35 }
 0x64d   : > { %v1561_v7 = vmul.f32 %v1524_v5, %v1451_v34  ;;  %v1604_v8 = vrot.slane %v1560_v16, 7  ;;  %v1465_v22 = vadd.f32 %v1464_v62, %v1463_v54  ;;  %v1588_v43 = vsel %vm1587_vm5, %v1586_v25, %v1585_v30  ;;  %v3326_v25 = vld [vmem:[#allocation18_spill] sm:$0xff]  ;;  %v3333_v30 = vld [vmem:[#allocation21_spill] sm:$0xff] }
 0x64e   : > { %v1476_v49 = vrot.slane %v1475_v24, 2  ;;  %v1526_v36 = vpop.permute.xlu0 %1525  ;;  %v1482_v1 = vadd.f32 %v1481_v29, %v1480_v42  ;;  %v1592_v29 = vrot.slane %v1555_v9, 4  ;;  %v1668_v41 = vrot.slane %v3326_v25, 6  ;;  %v3329_v9 = vld [vmem:[#allocation9_spill] sm:$0xff] }
 0x64f   : > { %v1562_v13 = vmul.f32 %v1526_v36, %v1458_v32  ;;  %v1606_v51 = vrot.slane %v1561_v7, 6  ;;  %v3328_v7 = vld [vmem:[#allocation23_spill] sm:$0xff]  ;;  %v1654_v32 = vrot.slane %v3329_v9, 6 }
 0x650   : > { %v1520_v17 = vpop.permute.xlu1 %1519  ;;  %v1477_v3 = vadd.f32 %v1476_v49, %v1475_v24  ;;  %v1483_v39 = vrot.slane %v1482_v1, 2  ;;  %v1472_v24 = vadd.f32 %v1471_v40, %v1470_v56 }
 0x651   : > { %v1559_v26 = vmul.f32 %v1520_v17, %v1437_v61  ;;  %v1608_v52 = vrot.slane %v1562_v13, 5  ;;  %v1674_v13 = vrot.slane %v3333_v30, 3 }
 0x652   : > { %v1528_v0 = vpop.permute.xlu0 %1527  ;;  %v1478_v6 = vrot.slane %v1477_v3, 1  ;;  %v1484_v21 = vadd.f32 %v1483_v39, %v1482_v1  ;;  %v1591_v1 = vsel %vm1590_vm6, %v1589_v11, %v1588_v43 }
 0x653   : > { %v1605_v58 = vsel %vm1584_vm4, %v1604_v8, %v1559_v26  ;;  %v1563_v55 = vmul.f32 %v1528_v0, %v1465_v22  ;;  %v1594_v18 = vsel %vm1593_vm7, %v1592_v29, %v1591_v1  ;;  %v3327_v26 = vld [vmem:[#allocation19_spill] sm:$0xff]  ;;  %v3330_v8 = vld [vmem:[#allocation10_spill] sm:$0xff]  ;;  %v3336_v29 = vld [vmem:[#allocation20_spill] sm:$0xff] }
 0x654   : > { %v1514_v4 = vpop.permute.xlu1 %1513  ;;  %v1479_v5 = vadd.f32 %v1478_v6, %v1477_v3  ;;  %v1607_v27 = vsel %vm1587_vm5, %v1606_v51, %v1605_v58  ;;  %v1485_v49 = vrot.slane %v1484_v21, 1  ;;  %v1667_v62 = vrot.slane %v3327_v26, 7  ;;  %v3331_v6 = vld [vmem:[#allocation12_spill] sm:$0xff]  ;;  %v3334_v22 = vld [vmem:[#allocation14_spill] sm:$0xff] }
 0x655   : > { %v1556_v59 = vmul.f32 %v1514_v4, %v1416_v53  ;;  %v1609_v20 = vsel %vm1590_vm6, %v1608_v52, %v1607_v27  ;;  %v1610_v19 = vrot.slane %v1563_v55, 4  ;;  %v1670_v53 = vrot.slane %v3328_v7, 5  ;;  %v3337_v27 = vld [vmem:[#allocation15_spill] sm:$0xff] }
 0x656   : > { %v1530_v63 = vpop.permute.xlu0 %1529  ;;  %v1486_v15 = vadd.f32 %v1485_v49, %v1484_v21  ;;  %v1669_v57 = vsel %vm1584_vm4, %v1668_v41, %v1667_v62  ;;  %v1656_v11 = vrot.slane %v3331_v6, 5  ;;  %v1676_v55 = vrot.slane %v3336_v29, 2  ;;  %v3338_v49 = vld [vmem:[#allocation13_spill] sm:$0xff] }
 0x657   : > { %v1595_v12 = vrot.slane %v1556_v59, 3  ;;  %v1564_v2 = vmul.f32 %v1530_v63, %v1472_v24  ;;  %v1611_v61 = vsel %vm1593_vm7, %v1610_v19, %v1609_v20  ;;  %v1653_v63 = vrot.slane %v3330_v8, 7  ;;  %v3332_v59 = vld [vmem:[#allocation17_spill] sm:$0xff]  ;;  %v3335_v24 = vld [vmem:[#allocation11_spill] sm:$0xff] }
 0x658   : > { %v1516_v42 = vpop.permute.xlu1 %1515  ;;  %v1671_v21 = vsel %vm1587_vm5, %v1670_v53, %v1669_v57  ;;  %v1662_v52 = vrot.slane %v3338_v49, 2 }
 0x659   : > { %v1557_v50 = vmul.f32 %v1516_v42, %v1423_v10  ;;  %v1597_v37 = vsel %vm1596_vm8, %v1595_v12, %v1594_v18  ;;  %v1612_v17 = vrot.slane %v1564_v2, 3  ;;  %v1672_v10 = vrot.slane %v3332_v59, 4  ;;  %v1850_v18 = vld [vmem:[%s3250_s3 + $0x4] ss:$0 sm:$0xff] }
 0x65a   : > { %v1532_v45 = vpop.permute.xlu0 %1531  ;;  %v1655_v58 = vsel %vm1584_vm4, %v1654_v32, %v1653_v63  ;;  %v1660_v42 = vrot.slane %v3334_v22, 3  ;;  %v1664_v12 = vrot.slane %v3337_v27, 1 }
 0x65b   : > { %v1598_v36 = vrot.slane %v1557_v50, 2  ;;  %v1565_v31 = vmul.f32 %v1532_v45, %v1479_v5  ;;  %v1613_v0 = vsel %vm1596_vm8, %v1612_v17, %v1611_v61  ;;  %v1673_v43 = vsel %vm1590_vm6, %v1672_v10, %v1671_v21 }
 0x65c   : > { %v1518_v60 = vpop.permute.xlu1 %1517  ;;  %v1657_v51 = vsel %vm1587_vm5, %v1656_v11, %v1655_v58  ;;  %v1658_v50 = vrot.slane %v3335_v24, 4  ;;  %v1678_v5 = vrot.slane %v2777_v28, 1  ;;  %v1675_v45 = vsel %vm1593_vm7, %v1674_v13, %v1673_v43 }
 0x65d   : > { %v1558_v38 = vmul.f32 %v1518_v60, %v1430_v48  ;;  %v1600_v14 = vsel %vm1599_vm9, %v1598_v36, %v1597_v37  ;;  %v1614_v56 = vrot.slane %v1565_v31, 2  ;;  %v1677_v36 = vsel %vm1596_vm8, %v1676_v55, %v1675_v45 }
 0x65e   : > { %v1659_v48 = vsel %vm1590_vm6, %v1658_v50, %v1657_v51  ;;  %v1679_v31 = vsel %vm1599_vm9, %v1678_v5, %v1677_v36 }
 0x65f   : > { %v1601_v54 = vrot.slane %v1558_v38, 1  ;;  %v1615_v35 = vsel %vm1599_vm9, %v1614_v56, %v1613_v0  ;;  %v1661_v2 = vsel %vm1593_vm7, %v1660_v42, %v1659_v48  ;;  %v1680_v28 = vsel %vm1602_vm10, %v2768_v23, %v1679_v31 }
 0x660   : > { %v1534_v46 = vpop.permute.xlu1 %1533  ;;  %v1663_v60 = vsel %vm1596_vm8, %v1662_v52, %v1661_v2 }
 0x661   : > { %v1566_v16 = vmul.f32 %v1534_v46, %v1486_v15  ;;  %v1603_v44 = vsel %vm1602_vm10, %v1601_v54, %v1600_v14  ;;  %v1665_v1 = vsel %vm1599_vm9, %v1664_v12, %v1663_v60 }
 0x662   : > { %1618 = vrot.lane.b32.xlu0 %v1603_v44, %s2348_s14  ;;  %v1666_v38 = vsel %vm1602_vm10, %v2703_v33, %v1665_v1 }
 0x663   : > { %v1616_v3 = vrot.slane %v1566_v16, 1 }
 0x665   : > { %v1617_v39 = vsel %vm1602_vm10, %v1616_v3, %v1615_v35 }
 0x666   : > { %1620 = vrot.lane.b32.xlu1 %v1617_v39, %s2348_s14 }
 0x6d4   : > { %v1619_v34 = vpop.permute.xlu0 %1618 }
 0x6d5   : > { %v1624_v47 = vsel %vm274_vm0, %v1619_v34, 0.0 }
 0x6d6   : > { %1625 = vadd.xlane.f32.xlu0 %v1624_v47 }
 0x6d8   : > { %v1621_v4 = vpop.permute.xlu1 %1620 }
 0x6d9   : > { %v1627_v40 = vsel %vm274_vm0, %v1621_v4, 0.0 }
 0x6da   : > { %1628 = vadd.xlane.f32.xlu1 %v1627_v40 }
 0x6eb   : > { %1683 = vrot.lane.b32.xlu1 %v1680_v28, %s2349_s15 }
 0x6ec   : > { %1681 = vrot.lane.b32.xlu0 %v1666_v38, %s2349_s15 }
 0x763   : > { %v1626_v20 = vpop.xlane.xlu0 %1625 }
 0x764   : > { %v1635_v19 = vmul.f32 %v1850_v18, %v1626_v20 }
 0x767   : > { %v1682_v37 = vpop.permute.xlu0 %1681  ;;  %v1629_v17 = vpop.xlane.xlu1 %1628 }
 0x768   : > { %v1687_v54 = vadd.f32 %v1682_v37, %v1635_v19  ;;  %v1636_v15 = vmul.f32 %v1850_v18, %v1629_v17 }
 0x76a   : > { %v1689_v14 = vsel %vm948_vm2, %v1687_v54, -inf }
 0x76b   : > { %1690 = vmax.xlane.f32.xlu0 %v1689_v14  ;;  %v1684_v23 = vpop.permute.xlu1 %1683 }
 0x76c   : > { %v1688_v56 = vadd.f32 %v1684_v23, %v1636_v15 }
 0x76e   : > { %v1692_v46 = vsel %vm948_vm2, %v1688_v56, -inf }
 0x76f   : > { %1693 = vmax.xlane.f32.xlu1 %v1692_v46 }
 0x7f8   : > { %v1691_v33 = vpop.xlane.xlu0 %1690 }
 0x7f9   : > { %v1695_v16 = vsub.f32 %v1687_v54, %v1691_v33 }
 0x7fb   : > { %v1697_v44 = vmul.f32 1.442695, %v1695_v16 }
 0x7fc   : > { %v1694_v61 = vpop.xlane.xlu1 %1693 }
 0x7fd   : > { %2204 = vpow2.f32 %v1697_v44  ;;  %v1696_v0 = vsub.f32 %v1688_v56, %v1694_v61 }
 0x7ff   : > { %v1699_v3 = vmul.f32 1.442695, %v1696_v0 }
 0x801   : > { %2206 = vpow2.f32 %v1699_v3 }
 0x807   : > { %v2205_v35 = vpop.eup %2204 }
 0x808   : > { %v1701_v39 = vsel %vm948_vm2, %v2205_v35, 0.0 }
 0x809   : > { %1702 = vadd.xlane.f32.xlu0 %v1701_v39 }
 0x80b   : > { %v2207_v34 = vpop.eup %2206 }
 0x80c   : > { %v1704_v47 = vsel %vm948_vm2, %v2207_v34, 0.0 }
 0x80d   : > { %1705 = vadd.xlane.f32.xlu0 %v1704_v47 }
 0x896   : > { %v1703_v25 = vpop.xlane.xlu0 %1702 }
 0x897   : > { %2208 = vrcp.f32 %v1703_v25 }
 0x89a   : > { %v1706_v41 = vpop.xlane.xlu0 %1705 }
 0x89b   : > { %2210 = vrcp.f32 %v1706_v41 }
 0x8a1   : > { %v2209_v26 = vpop.eup %2208 }
 0x8a2   : > { %v1708_v62 = vmul.f32 %v2209_v26, %v2205_v35 }
 0x8a4   : > { %1711 = vst.msk [vmem:[%s247_s21] sm:$0xff] %vm948_vm2, %v1708_v62 }
 0x8a5   : > { %v2211_v4 = vpop.eup %2210 }
 0x8a6   : > { %v1710_v7 = vmul.f32 %v2211_v4, %v2207_v34 }
 0x8a8   : > { %1712 = vst.msk [vmem:[%s247_s21 + $0x8] sm:$0xff] %vm948_vm2, %v1710_v7 }
 0x8a9 PF: > { %p15_p6 = scmp.ge.s32.totalorder %s2477_s7, 4   ;;  %s3339_s15 = smov %s2329_s16 }
 0x8aa   : > { %s3340_s16 = smov %s2333_s17  ;;  %s3341_s17 = smov %s2488_s12 }
 0x8ab   : > { %s3342_s18 = smov %s2477_s7  ;;  %17 = sbr.rel (!%p15_p6) target bundleno = 4 (0x4), region = 84 }
 0x8b2   :  { %1735 = vsyncpa [#allocation3], 1 }
 0x8b3   :  { %1737 = vsyncpa [#allocation3 + $0x1], 1 }
 0x8b4   :  { %1738 = vsyncpa [#allocation5], 1 }

</bundles_post_ra>
